<compile_context>
chip_gen: v7x
topology: tpu7x:2x2x1
jax: 0.10.0
libtpu: 0.0.40
codegen_flags: <defaults>
</compile_context>

<pallas_src>
import functools

import jax
import jax.numpy as jnp
from jax.experimental import pallas as pl
from jax.experimental.pallas import tpu as pltpu


def _round_up(n, m):
    return ((n + m - 1) // m) * m


def _cores_per_chip():
    """Schedulable TensorCores per chip (v7x/v4/v5p: 2, v5e/v6e: 1)."""
    try:
        kind = jax.devices()[0].device_kind.lower()
    except Exception:
        return 1
    return 2 if any(tag in kind for tag in ("v7", "7x", "v4", "v5p")) else 1


def _choose_tiles(B, T, cores, max_rows=2048):
    """Pick (samples_per_step bb, time_tile tT)."""
    # Time tile: largest divisor of T that is a multiple of 8 sublanes and fits max_rows.
    t_cands = [t for t in range(8, T + 1, 8) if T % t == 0 and t <= max_rows]
    tt = max(t_cands) if t_cands else T
    # Batch tile: the grid is a sequential loop on one TC, so single-core chips want G == 1
    # (maximize MXU rows / amortize ~0.35us step overhead); dual-core chips want the
    # batch-axis step count to split evenly across both TensorCores.
    b_cands = [b for b in range(1, B + 1) if B % b == 0 and b * tt <= max_rows] or [1]
    if cores > 1:
        even = [b for b in b_cands if (B // b) % cores == 0]
        return (max(even) if even else max(b_cands)), tt
    return max(b_cands), tt


def _vmem_limit_bytes(bb, tt, F, Hp, Cp, L, mm_itemsize, single_buffer_weights):
    """Rough resident-VMEM footprint -> scoped limit with headroom (capped for v7x)."""
    lp = lambda n: _round_up(n, 128)
    sp = lambda n: _round_up(n, 8)
    wbuf = 1 if single_buffer_weights else 2
    m = bb * tt
    est = (2 * bb * sp(tt) * lp(F) * mm_itemsize                       # x double buffer
           + wbuf * (L * Hp * Hp + Hp * 2 * Cp) * mm_itemsize          # weights
           + wbuf * (sp(L) * Hp + 8 * 2 * Cp) * 4                      # f32 biases
           + 2 * sp(bb) * Cp * 4                                       # output double buffer
           + 2 * sp(bb) * Cp * 4                                       # accumulators
           + 4 * sp(m) * Hp * 4 + 2 * sp(m) * 2 * Cp * 4)              # live activation slabs
    return int(min(max(2 * est + (8 << 20), 32 << 20), 64 << 20))


def _const_index_map(ndim):
    def idx(g, t):
        return (0,) * ndim
    return idx


def _dlsa_kernel(x_ref, convw_ref, convb_ref, wac_ref, bac_ref, o_ref,
                 num_acc, den_acc, *, emb_layers, bb, tt, cp):
    """Grid step (g, t): bb samples x tt time steps.  x_ref block is (bb, tt, F), F un-padded."""
    t_step = pl.program_id(1)
    f = x_ref.shape[-1]
    m = bb * tt
    mm_dtype = wac_ref.dtype                    # matmul-operand dtype (bf16 or f32)

    @pl.when(t_step == 0)
    def _():
        num_acc[...] = jnp.zeros_like(num_acc)
        den_acc[...] = jnp.zeros_like(den_acc)

    x2d = x_ref[...].reshape(m, f)              # raw input rows for this tile

    # ---- EmbeddingLayers (eval): BN folded into W/bias in the wrapper; dropout = identity.
    out = x2d
    for i in range(emb_layers):                 # static unroll
        w_i = convw_ref[i]                      # (Hp, Hp); layer 0 contracts only over K = F
        b_i = convb_ref[pl.ds(i, 1), :]         # (1, Hp) float32
        rhs = w_i[:f, :] if i == 0 else w_i
        y = jnp.dot(out.astype(mm_dtype), rhs,
                    preferred_element_type=jnp.float32) + b_i
        out = jnp.maximum(y, 0.0)               # ReLU

    # ---- Attention head with the residual folded into the matmul:
    #      (h + pad(x)) @ Wac == h @ Wac + x @ Wac[:F]   (Wac rows >= H are zero anyway).
    wac = wac_ref[...]
    z = (jnp.dot(out.astype(mm_dtype), wac, preferred_element_type=jnp.float32)
         + jnp.dot(x2d.astype(mm_dtype), wac[:f, :], preferred_element_type=jnp.float32)
         + bac_ref[...])                                        # (M, 2*Cp)
    z = 0.5 * jnp.tanh(0.5 * z) + 0.5                           # sigmoid via EUP tanh
    z = z.reshape(bb, tt, 2 * cp)                               # tt % 8 == 0 -> tile-aligned

    eps = 1e-7
    att = jnp.clip(z[:, :, :cp], eps, 1.0 - eps)                # lane-tile-aligned split
    cla = z[:, :, cp:]
    num_acc[...] += jnp.sum(att * cla, axis=1)                  # (bb, Cp)
    den_acc[...] += jnp.sum(att, axis=1)

    @pl.when(t_step == pl.num_programs(1) - 1)
    def _():
        # approx=False keeps exact parity with the reference divide.
        res = num_acc[...] * pl.reciprocal(den_acc[...], approx=False)
        o_ref[0] = jnp.clip(res, 0.0, 1.0)                      # hardtanh(., 0, 1)


def _forward(x_in, conv_w_p, conv_b_p, w_ac, b_ac, *, emb_layers, bb, tt, Cp,
             single_buffer_weights, vmem_limit_bytes, cost_estimate):
    B, T, F = x_in.shape
    L, Hp, _ = conv_w_p.shape
    G, KT = B // bb, T // tt

    def const_spec(shape):
        idx = _const_index_map(len(shape))
        if single_buffer_weights:
            # Grid-constant operand: the default second pipeline buffer is a dead copy.
            return pl.BlockSpec(shape, idx, pipeline_mode=pl.Buffered(1))
        return pl.BlockSpec(shape, idx)

    kernel = functools.partial(_dlsa_kernel, emb_layers=emb_layers, bb=bb, tt=tt, cp=Cp)
    out = pl.pallas_call(
        kernel,
        out_shape=jax.ShapeDtypeStruct((G, bb, Cp), jnp.float32),
        grid_spec=pltpu.PrefetchScalarGridSpec(
            num_scalar_prefetch=0,
            grid=(G, KT),
            in_specs=[
                pl.BlockSpec((bb, tt, F), lambda g, t: (g, t, 0)),   # streamed x, un-padded F
                const_spec((L, Hp, Hp)),                             # folded conv weights
                const_spec((L, Hp)),                                 # folded conv biases
                const_spec((Hp, 2 * Cp)),                            # fused att|cla weights
                const_spec((1, 2 * Cp)),                             # fused att|cla biases
            ],
            out_specs=pl.BlockSpec((1, bb, Cp), lambda g, t: (g, 0, 0)),
            scratch_shapes=[pltpu.VMEM((bb, Cp), jnp.float32),       # sum(att * cla)
                            pltpu.VMEM((bb, Cp), jnp.float32)],      # sum(att)
        ),
        compiler_params=pltpu.CompilerParams(
            dimension_semantics=("parallel", "arbitrary"),
            vmem_limit_bytes=vmem_limit_bytes),
        cost_estimate=cost_estimate,
    )(x_in, conv_w_p, conv_b_p, w_ac, b_ac)
    return out.reshape(B, Cp)


def decision_level_single_attention(x, params, *, emb_layers, samples_per_step=None,
                                    time_tile=None, matmul_dtype=None,
                                    single_buffer_weights=None, max_rows=2048):
    """x: (B, T, freq_bins) float32  ->  (B, classes_num) float32 (eval-mode forward)."""
    B, T, F = x.shape
    H = params["conv_w"].shape[-1]
    C = params["w_att"].shape[-1]
    assert emb_layers >= 1, "kernel expects at least one embedding layer"
    assert F == H, "residual add in EmbeddingLayers requires freq_bins == hidden_units"
    assert T % 8 == 0, "kernel expects time_steps to be a multiple of 8 sublanes"

    if matmul_dtype is None:
        matmul_dtype = jnp.bfloat16          # bf16 MXU operands on every generation
    Hp = _round_up(H, 128)                   # lane-pad channels (weights only)
    Cp = _round_up(C, 128)                   # lane-pad classes (per head)
    L = emb_layers

    # ---- wrapper-side: fold BatchNorm (eval) into conv weights + per-layer bias ----
    s, b = params["bn_scale"], params["bn_shift"]              # (L+1, H)
    conv_w = params["conv_w"]                                  # (L, H, H)  (in -> out)
    w_list, b_list = [], []
    for i in range(L):
        wi = conv_w[i] * s[i + 1][None, :]                     # fold post-conv BN scale
        bi = b[i + 1]                                          # fold post-conv BN shift
        if i == 0:                                             # fold the input BN0 as well
            bi = bi + b[0] @ wi
            wi = s[0][:, None] * wi
        w_list.append(wi)
        b_list.append(bi)
    conv_w_f = jnp.stack(w_list)                               # (L, H, H)
    conv_b_f = jnp.stack(b_list)                               # (L, H)

    # ---- zero-pad channel/class dims of the WEIGHTS to the 128-lane vreg width ----
    conv_w_p = jnp.zeros((L, Hp, Hp), jnp.float32).at[:, :H, :H].set(conv_w_f)
    conv_b_p = jnp.zeros((L, Hp), jnp.float32).at[:, :H].set(conv_b_f)

    # ---- fuse + pad the attention heads: att -> lanes [0,Cp), cla -> lanes [Cp,2Cp) ----
    w_ac = jnp.zeros((Hp, 2 * Cp), jnp.float32)
    w_ac = w_ac.at[:H, :C].set(params["w_att"]).at[:H, Cp:Cp + C].set(params["w_cla"])
    b_ac = jnp.zeros((1, 2 * Cp), jnp.float32)
    b_ac = b_ac.at[:, :C].set(params["b_att"]).at[:, Cp:Cp + C].set(params["b_cla"])

    # bf16 operands for the MXU; biases and all element-wise math stay f32 (v5e-safe).
    conv_w_p = conv_w_p.astype(matmul_dtype)
    w_ac = w_ac.astype(matmul_dtype)
    # x is the only per-grid-step streamed operand: keep it UN-padded (F, not Hp) and in
    # the matmul dtype, so its HBM stream is as small as possible.
    x_in = x.astype(matmul_dtype)

    cores = _cores_per_chip()
    auto_bb, auto_tt = _choose_tiles(B, T, cores, max_rows=max_rows)
    bb = samples_per_step or auto_bb
    tt = time_tile or auto_tt
    assert B % bb == 0, f"samples_per_step={bb} must divide batch={B}"
    assert T % tt == 0 and tt % 8 == 0, f"time_tile={tt} must divide T={T} and be 8-aligned"

    itemsize = jnp.dtype(matmul_dtype).itemsize
    vmem_limit = _vmem_limit_bytes(bb, tt, F, Hp, Cp, L, itemsize,
                                   single_buffer_weights is not False)
    cost = pl.CostEstimate(
        flops=int(2 * B * T * (L * Hp * Hp + (Hp + F) * 2 * Cp)),
        transcendentals=int(B * T * 2 * Cp),
        bytes_accessed=int(x_in.size * x_in.dtype.itemsize
                           + conv_w_p.size * itemsize + conv_b_p.size * 4
                           + w_ac.size * itemsize + b_ac.size * 4 + B * Cp * 4),
    )

    run = functools.partial(
        _forward, x_in, conv_w_p, conv_b_p, w_ac, b_ac,
        emb_layers=L, bb=bb, tt=tt, Cp=Cp,
        vmem_limit_bytes=vmem_limit, cost_estimate=cost)

    if single_buffer_weights is None:
        try:
            out = jax.block_until_ready(run(single_buffer_weights=True))
        except Exception:
            # pl.Buffered(1) unsupported by this jax/libtpu -> plain double-buffered weights.
            out = run(single_buffer_weights=False)
    else:
        out = run(single_buffer_weights=single_buffer_weights)
    return out[:, :C]


def reference(x, params, *, emb_layers):
    """Pure-JAX mirror of the PyTorch forward (eval mode) for verification."""
    bn_scale, bn_shift = params["bn_scale"], params["bn_shift"]
    out = x * bn_scale[0] + bn_shift[0]
    residual = x
    for i in range(emb_layers):
        y = jnp.einsum("btf,fh->bth", out, params["conv_w"][i])
        y = y * bn_scale[i + 1] + bn_shift[i + 1]
        out = jnp.maximum(y, 0.0)
    out = out + residual
    att = jax.nn.sigmoid(jnp.einsum("bth,hc->btc", out, params["w_att"]) + params["b_att"])
    cla = jax.nn.sigmoid(jnp.einsum("bth,hc->btc", out, params["w_cla"]) + params["b_cla"])
    att = jnp.clip(att, 1e-7, 1.0 - 1e-7)
    norm_att = att / jnp.sum(att, axis=1, keepdims=True)
    res = jnp.sum(norm_att * cla, axis=1)
    return jnp.clip(res, 0.0, 1.0)


def init_params(key, freq_bins, hidden_units, classes_num, emb_layers):
    # The residual add in EmbeddingLayers (out + x) requires freq_bins == hidden_units.
    assert freq_bins == hidden_units
    keys = jax.random.split(key, emb_layers + 6)

    def glorot(k, shape):
        fan_in, fan_out = shape[-2], shape[-1]
        lim = (6.0 / (fan_in + fan_out)) ** 0.5
        return jax.random.uniform(k, shape, jnp.float32, -lim, lim)

    # Conv2d 1x1 weights, stored pre-transposed as (in_channels, out_channels).
    conv_w = jnp.stack([glorot(keys[i], (hidden_units, hidden_units))
                        for i in range(emb_layers)])

    # BatchNorm2d (eval): gamma=1, beta=0 (init_bn); non-trivial running stats so the
    # wrapper-side BN folding is actually exercised.
    gamma = jnp.ones((emb_layers + 1, hidden_units), jnp.float32)
    beta = jnp.zeros_like(gamma)
    running_mean = 0.1 * jax.random.normal(keys[emb_layers + 4], gamma.shape, jnp.float32)
    running_var = jax.random.uniform(keys[emb_layers + 5], gamma.shape, jnp.float32, 0.5, 1.5)
    bn_scale = gamma * jax.lax.rsqrt(running_var + 1e-5)
    bn_shift = beta - running_mean * bn_scale

    w_att = glorot(keys[emb_layers], (hidden_units, classes_num))
    w_cla = glorot(keys[emb_layers + 1], (hidden_units, classes_num))
    b_att = 0.01 * jax.random.normal(keys[emb_layers + 2], (1, classes_num), jnp.float32)
    b_cla = 0.01 * jax.random.normal(keys[emb_layers + 3], (1, classes_num), jnp.float32)

    return dict(conv_w=conv_w, bn_scale=bn_scale, bn_shift=bn_shift,
                w_att=w_att, b_att=b_att, w_cla=w_cla, b_cla=b_cla)


if __name__ == "__main__":
    B, T = 4, 16
    freq_bins = hidden_units = 32
    classes_num = 8
    emb_layers = 2

    key = jax.random.PRNGKey(0)
    kx, kp = jax.random.split(key)
    # The module's effective input layout is (samples_num, time_steps, freq_bins).
    x = jax.random.normal(kx, (B, T, freq_bins), jnp.float32)
    params = init_params(kp, freq_bins, hidden_units, classes_num, emb_layers)

    ref = reference(x, params, emb_layers=emb_layers)

    # f32 MXU-operand path: exact parity with the eval-mode reference.
    out = decision_level_single_attention(x, params, emb_layers=emb_layers,
                                          matmul_dtype=jnp.float32)
    out = jax.block_until_ready(out)
    assert out.shape == (B, classes_num)
    if not jnp.allclose(out, ref, atol=1e-4, rtol=1e-4):
        raise AssertionError(f"f32 mismatch:\n{out}\nvs\n{ref}")

    # Default path: bf16 MXU operands + bf16 x stream (element-wise math stays f32).
    out_bf16 = decision_level_single_attention(x, params, emb_layers=emb_layers)
    out_bf16 = jax.block_until_ready(out_bf16)
    if not jnp.allclose(out_bf16, ref, atol=5e-2, rtol=0.0):
        raise AssertionError(f"bf16 mismatch:\n{out_bf16}\nvs\n{ref}")

    print("KERNEL_OK")
</pallas_src>

<mosaic_0001>
module attributes {stable_mosaic.version = 11 : i64} {
  func.func @_dlsa_kernel(%arg0: i32, %arg1: i32, %arg2: memref<4x16x32xf32, #tpu.memory_space<vmem>>, %arg3: memref<2x128x128xf32, #tpu.memory_space<vmem>>, %arg4: memref<2x128xf32, #tpu.memory_space<vmem>>, %arg5: memref<128x256xf32, #tpu.memory_space<vmem>>, %arg6: memref<1x256xf32, #tpu.memory_space<vmem>>, %arg7: memref<1x4x128xf32, #tpu.memory_space<vmem>>, %arg8: memref<4x128xf32, #tpu.memory_space<vmem>>, %arg9: memref<4x128xf32, #tpu.memory_space<vmem>>) attributes {dimension_semantics = [#tpu.dimension_semantics<parallel>, #tpu.dimension_semantics<arbitrary>], iteration_bounds = array<i64: 1, 1>, scalar_prefetch = 0 : i64, scratch_operands = 2 : i64, tpu.core_type = #tpu.core_type<tc>, window_params = [{transform_indices = @transform_0, window_bounds = array<i64: 4, 16, 32>}, {pipeline_mode = #tpu.pipeline_mode<synchronous>, transform_indices = @transform_1, window_bounds = array<i64: 2, 128, 128>}, {pipeline_mode = #tpu.pipeline_mode<synchronous>, transform_indices = @transform_2, window_bounds = array<i64: 2, 128>}, {pipeline_mode = #tpu.pipeline_mode<synchronous>, transform_indices = @transform_3, window_bounds = array<i64: 128, 256>}, {pipeline_mode = #tpu.pipeline_mode<synchronous>, transform_indices = @transform_4, window_bounds = array<i64: 1, 256>}, {transform_indices = @transform_5, window_bounds = array<i64: 1, 4, 128>}]} {
    %c0_i32 = arith.constant 0 : i32
    %0 = arith.cmpi eq, %arg1, %c0_i32 : i32
    %1 = arith.extui %0 : i1 to i32
    %c0_i32_0 = arith.constant 0 : i32
    %2 = arith.cmpi ne, %1, %c0_i32_0 : i32
    scf.if %2 {
      %cst_38 = arith.constant 0.000000e+00 : f32
      %56 = vector.broadcast %cst_38 : f32 to vector<4x128xf32>
      %c0_39 = arith.constant 0 : index
      %c0_40 = arith.constant 0 : index
      %57 = vector.load %arg8[%c0_39, %c0_40] : memref<4x128xf32, #tpu.memory_space<vmem>>, vector<4x128xf32>
      tpu.vector_store %arg8[%c0_39, %c0_40], %56 {strides = array<i32>} : memref<4x128xf32, #tpu.memory_space<vmem>>, vector<4x128xf32>,
      %cst_41 = arith.constant 0.000000e+00 : f32
      %58 = vector.broadcast %cst_41 : f32 to vector<4x128xf32>
      %c0_42 = arith.constant 0 : index
      %c0_43 = arith.constant 0 : index
      %59 = vector.load %arg9[%c0_42, %c0_43] : memref<4x128xf32, #tpu.memory_space<vmem>>, vector<4x128xf32>
      tpu.vector_store %arg9[%c0_42, %c0_43], %58 {strides = array<i32>} : memref<4x128xf32, #tpu.memory_space<vmem>>, vector<4x128xf32>,
    } else {
    }
    %c0 = arith.constant 0 : index
    %c0_1 = arith.constant 0 : index
    %c0_2 = arith.constant 0 : index
    %3 = vector.load %arg2[%c0, %c0_1, %c0_2] : memref<4x16x32xf32, #tpu.memory_space<vmem>>, vector<4x16x32xf32>
    %4 = vector.shape_cast %3 : vector<4x16x32xf32> to vector<64x32xf32>
    %c0_3 = arith.constant 0 : index
    %c0_4 = arith.constant 0 : index
    %c0_5 = arith.constant 0 : index
    %5 = vector.load %arg3[%c0_3, %c0_4, %c0_5] : memref<2x128x128xf32, #tpu.memory_space<vmem>>, vector<1x128x128xf32>
    %6 = vector.shape_cast %5 : vector<1x128x128xf32> to vector<128x128xf32>
    %c0_6 = arith.constant 0 : index
    %c0_7 = arith.constant 0 : index
    %7 = vector.load %arg4[%c0_6, %c0_7] : memref<2x128xf32, #tpu.memory_space<vmem>>, vector<1x128xf32>
    %8 = vector.extract_strided_slice %6 {offsets = [0, 0], sizes = [32, 128], strides = [1, 1]} : vector<128x128xf32> to vector<32x128xf32>
    %cst = arith.constant dense<0.000000e+00> : vector<64x128xf32>
    %9 = tpu.matmul %4, %8, %cst {dimension_numbers = #tpu.dot_dimension_numbers<[1], [0], [0], [1], [0, 0, 1, 1], [], []>} : vector<64x32xf32>, vector<32x128xf32>, vector<64x128xf32> -> vector<64x128xf32>
    %10 = vector.broadcast %7 : vector<1x128xf32> to vector<64x128xf32>
    %11 = arith.addf %9, %10 : vector<64x128xf32>
    %cst_8 = arith.constant 0.000000e+00 : f32
    %12 = vector.broadcast %cst_8 : f32 to vector<64x128xf32>
    %13 = arith.maximumf %11, %12 : vector<64x128xf32>
    %c1 = arith.constant 1 : index
    %c0_9 = arith.constant 0 : index
    %c0_10 = arith.constant 0 : index
    %14 = vector.load %arg3[%c1, %c0_9, %c0_10] : memref<2x128x128xf32, #tpu.memory_space<vmem>>, vector<1x128x128xf32>
    %15 = vector.shape_cast %14 : vector<1x128x128xf32> to vector<128x128xf32>
    %c1_11 = arith.constant 1 : index
    %c0_12 = arith.constant 0 : index
    %16 = vector.load %arg4[%c1_11, %c0_12] : memref<2x128xf32, #tpu.memory_space<vmem>>, vector<1x128xf32>
    %cst_13 = arith.constant dense<0.000000e+00> : vector<64x128xf32>
    %17 = tpu.matmul %13, %15, %cst_13 {dimension_numbers = #tpu.dot_dimension_numbers<[1], [0], [0], [1], [0, 0, 1, 1], [], []>} : vector<64x128xf32>, vector<128x128xf32>, vector<64x128xf32> -> vector<64x128xf32>
    %18 = vector.broadcast %16 : vector<1x128xf32> to vector<64x128xf32>
    %19 = arith.addf %17, %18 : vector<64x128xf32>
    %cst_14 = arith.constant 0.000000e+00 : f32
    %20 = vector.broadcast %cst_14 : f32 to vector<64x128xf32>
    %21 = arith.maximumf %19, %20 : vector<64x128xf32>
    %c0_15 = arith.constant 0 : index
    %c0_16 = arith.constant 0 : index
    %22 = vector.load %arg5[%c0_15, %c0_16] : memref<128x256xf32, #tpu.memory_space<vmem>>, vector<128x256xf32>
    %cst_17 = arith.constant dense<0.000000e+00> : vector<64x256xf32>
    %23 = tpu.matmul %21, %22, %cst_17 {dimension_numbers = #tpu.dot_dimension_numbers<[1], [0], [0], [1], [0, 0, 1, 1], [], []>} : vector<64x128xf32>, vector<128x256xf32>, vector<64x256xf32> -> vector<64x256xf32>
    %24 = vector.extract_strided_slice %22 {offsets = [0, 0], sizes = [32, 256], strides = [1, 1]} : vector<128x256xf32> to vector<32x256xf32>
    %cst_18 = arith.constant dense<0.000000e+00> : vector<64x256xf32>
    %25 = tpu.matmul %4, %24, %cst_18 {dimension_numbers = #tpu.dot_dimension_numbers<[1], [0], [0], [1], [0, 0, 1, 1], [], []>} : vector<64x32xf32>, vector<32x256xf32>, vector<64x256xf32> -> vector<64x256xf32>
    %26 = arith.addf %23, %25 : vector<64x256xf32>
    %c0_19 = arith.constant 0 : index
    %c0_20 = arith.constant 0 : index
    %27 = vector.load %arg6[%c0_19, %c0_20] : memref<1x256xf32, #tpu.memory_space<vmem>>, vector<1x256xf32>
    %28 = vector.broadcast %27 : vector<1x256xf32> to vector<64x256xf32>
    %29 = arith.addf %26, %28 : vector<64x256xf32>
    %cst_21 = arith.constant 5.000000e-01 : f32
    %30 = vector.broadcast %cst_21 : f32 to vector<64x256xf32>
    %31 = arith.mulf %30, %29 : vector<64x256xf32>
    %32 = math.tanh %31 : vector<64x256xf32>
    %cst_22 = arith.constant 5.000000e-01 : f32
    %33 = vector.broadcast %cst_22 : f32 to vector<64x256xf32>
    %34 = arith.mulf %33, %32 : vector<64x256xf32>
    %cst_23 = arith.constant 5.000000e-01 : f32
    %35 = vector.broadcast %cst_23 : f32 to vector<64x256xf32>
    %36 = arith.addf %34, %35 : vector<64x256xf32>
    %37 = vector.shape_cast %36 : vector<64x256xf32> to vector<4x16x256xf32>
    %38 = vector.extract_strided_slice %37 {offsets = [0, 0, 0], sizes = [4, 16, 128], strides = [1, 1, 1]} : vector<4x16x256xf32> to vector<4x16x128xf32>
    %cst_24 = arith.constant 1.000000e-07 : f32
    %cst_25 = arith.constant 0.99999988 : f32
    %39 = vector.broadcast %cst_24 : f32 to vector<4x16x128xf32>
    %40 = arith.maximumf %39, %38 : vector<4x16x128xf32>
    %41 = vector.broadcast %cst_25 : f32 to vector<4x16x128xf32>
    %42 = arith.minimumf %41, %40 : vector<4x16x128xf32>
    %43 = vector.extract_strided_slice %37 {offsets = [0, 0, 128], sizes = [4, 16, 128], strides = [1, 1, 1]} : vector<4x16x256xf32> to vector<4x16x128xf32>
    %c0_26 = arith.constant 0 : index
    %c0_27 = arith.constant 0 : index
    %44 = vector.load %arg8[%c0_26, %c0_27] : memref<4x128xf32, #tpu.memory_space<vmem>>, vector<4x128xf32>
    %45 = arith.mulf %42, %43 : vector<4x16x128xf32>
    %cst_28 = arith.constant dense<0.000000e+00> : vector<4x128xf32>
    %46 = vector.multi_reduction <add>, %45, %cst_28 [1] : vector<4x16x128xf32> to vector<4x128xf32>
    %47 = arith.addf %44, %46 : vector<4x128xf32>
    %c0_29 = arith.constant 0 : index
    %c0_30 = arith.constant 0 : index
    %48 = vector.load %arg8[%c0_29, %c0_30] : memref<4x128xf32, #tpu.memory_space<vmem>>, vector<4x128xf32>
    tpu.vector_store %arg8[%c0_29, %c0_30], %47 {strides = array<i32>} : memref<4x128xf32, #tpu.memory_space<vmem>>, vector<4x128xf32>,
    %c0_31 = arith.constant 0 : index
    %c0_32 = arith.constant 0 : index
    %49 = vector.load %arg9[%c0_31, %c0_32] : memref<4x128xf32, #tpu.memory_space<vmem>>, vector<4x128xf32>
    %cst_33 = arith.constant dense<0.000000e+00> : vector<4x128xf32>
    %50 = vector.multi_reduction <add>, %42, %cst_33 [1] : vector<4x16x128xf32> to vector<4x128xf32>
    %51 = arith.addf %49, %50 : vector<4x128xf32>
    %c0_34 = arith.constant 0 : index
    %c0_35 = arith.constant 0 : index
    %52 = vector.load %arg9[%c0_34, %c0_35] : memref<4x128xf32, #tpu.memory_space<vmem>>, vector<4x128xf32>
    tpu.vector_store %arg9[%c0_34, %c0_35], %51 {strides = array<i32>} : memref<4x128xf32, #tpu.memory_space<vmem>>, vector<4x128xf32>,
    %c0_i32_36 = arith.constant 0 : i32
    %53 = arith.cmpi eq, %arg1, %c0_i32_36 : i32
    %54 = arith.extui %53 : i1 to i32
    %c0_i32_37 = arith.constant 0 : i32
    %55 = arith.cmpi ne, %54, %c0_i32_37 : i32
    scf.if %55 {
      %c0_38 = arith.constant 0 : index
      %c0_39 = arith.constant 0 : index
      %56 = vector.load %arg8[%c0_38, %c0_39] : memref<4x128xf32, #tpu.memory_space<vmem>>, vector<4x128xf32>
      %c0_40 = arith.constant 0 : index
      %c0_41 = arith.constant 0 : index
      %57 = vector.load %arg9[%c0_40, %c0_41] : memref<4x128xf32, #tpu.memory_space<vmem>>, vector<4x128xf32>
      %58 = tpu.reciprocal %57 : vector<4x128xf32> -> vector<4x128xf32>
      %59 = arith.mulf %56, %58 : vector<4x128xf32>
      %cst_42 = arith.constant 0.000000e+00 : f32
      %cst_43 = arith.constant 1.000000e+00 : f32
      %60 = vector.broadcast %cst_42 : f32 to vector<4x128xf32>
      %61 = arith.maximumf %60, %59 : vector<4x128xf32>
      %62 = vector.broadcast %cst_43 : f32 to vector<4x128xf32>
      %63 = arith.minimumf %62, %61 : vector<4x128xf32>
      %c0_44 = arith.constant 0 : index
      %c0_45 = arith.constant 0 : index
      %c0_46 = arith.constant 0 : index
      %64 = vector.load %arg7[%c0_44, %c0_45, %c0_46] : memref<1x4x128xf32, #tpu.memory_space<vmem>>, vector<1x4x128xf32>
      %65 = vector.shape_cast %64 : vector<1x4x128xf32> to vector<4x128xf32>
      %66 = vector.shape_cast %63 : vector<4x128xf32> to vector<1x4x128xf32>
      tpu.vector_store %arg7[%c0_44, %c0_45, %c0_46], %66 {strides = array<i32>} : memref<1x4x128xf32, #tpu.memory_space<vmem>>, vector<1x4x128xf32>,
    } else {
    }
    return
  }
  func.func @transform_0(%arg0: i32, %arg1: i32) -> (i32, i32, i32) {
    %c0_i32 = arith.constant 0 : i32
    %c0_i32_0 = arith.constant 0 : i32
    return %arg0, %arg1, %c0_i32 : i32, i32, i32
  }
  func.func @transform_1(%arg0: i32, %arg1: i32) -> (i32, i32, i32) {
    %c0_i32 = arith.constant 0 : i32
    %c0_i32_0 = arith.constant 0 : i32
    %c0_i32_1 = arith.constant 0 : i32
    %c0_i32_2 = arith.constant 0 : i32
    return %c0_i32, %c0_i32_0, %c0_i32_1 : i32, i32, i32
  }
  func.func @transform_2(%arg0: i32, %arg1: i32) -> (i32, i32) {
    %c0_i32 = arith.constant 0 : i32
    %c0_i32_0 = arith.constant 0 : i32
    %c0_i32_1 = arith.constant 0 : i32
    return %c0_i32, %c0_i32_0 : i32, i32
  }
  func.func @transform_3(%arg0: i32, %arg1: i32) -> (i32, i32) {
    %c0_i32 = arith.constant 0 : i32
    %c0_i32_0 = arith.constant 0 : i32
    %c0_i32_1 = arith.constant 0 : i32
    return %c0_i32, %c0_i32_0 : i32, i32
  }
  func.func @transform_4(%arg0: i32, %arg1: i32) -> (i32, i32) {
    %c0_i32 = arith.constant 0 : i32
    %c0_i32_0 = arith.constant 0 : i32
    %c0_i32_1 = arith.constant 0 : i32
    return %c0_i32, %c0_i32_0 : i32, i32
  }
  func.func @transform_5(%arg0: i32, %arg1: i32) -> (i32, i32, i32) {
    %c0_i32 = arith.constant 0 : i32
    %c0_i32_0 = arith.constant 0 : i32
    %c0_i32_1 = arith.constant 0 : i32
    return %arg0, %c0_i32, %c0_i32_0 : i32, i32, i32
  }
}

module attributes {stable_mosaic.version = 11 : i64} {
  func.func @_dlsa_kernel(%arg0: i32, %arg1: i32, %arg2: memref<4x16x32xf32, #tpu.memory_space<vmem>>, %arg3: memref<2x128x128xf32, #tpu.memory_space<vmem>>, %arg4: memref<2x128xf32, #tpu.memory_space<vmem>>, %arg5: memref<128x256xf32, #tpu.memory_space<vmem>>, %arg6: memref<1x256xf32, #tpu.memory_space<vmem>>, %arg7: memref<1x4x128xf32, #tpu.memory_space<vmem>>, %arg8: memref<4x128xf32, #tpu.memory_space<vmem>>, %arg9: memref<4x128xf32, #tpu.memory_space<vmem>>) attributes {dimension_semantics = [#tpu.dimension_semantics<parallel>, #tpu.dimension_semantics<arbitrary>], iteration_bounds = array<i64: 1, 1>, scalar_prefetch = 0 : i64, scratch_operands = 2 : i64, tpu.core_type = #tpu.core_type<tc>, window_params = [{transform_indices = @transform_0, window_bounds = array<i64: 4, 16, 32>}, {pipeline_mode = #tpu.pipeline_mode<synchronous>, transform_indices = @transform_1, window_bounds = array<i64: 2, 128, 128>}, {pipeline_mode = #tpu.pipeline_mode<synchronous>, transform_indices = @transform_2, window_bounds = array<i64: 2, 128>}, {pipeline_mode = #tpu.pipeline_mode<synchronous>, transform_indices = @transform_3, window_bounds = array<i64: 128, 256>}, {pipeline_mode = #tpu.pipeline_mode<synchronous>, transform_indices = @transform_4, window_bounds = array<i64: 1, 256>}, {transform_indices = @transform_5, window_bounds = array<i64: 1, 4, 128>}]} {
    %c0_i32 = arith.constant 0 : i32
    %0 = arith.cmpi eq, %arg1, %c0_i32 : i32
    %1 = arith.extui %0 : i1 to i32
    %c0_i32_0 = arith.constant 0 : i32
    %2 = arith.cmpi ne, %1, %c0_i32_0 : i32
    scf.if %2 {
      %cst_38 = arith.constant 0.000000e+00 : f32
      %56 = vector.broadcast %cst_38 : f32 to vector<4x128xf32>
      %c0_39 = arith.constant 0 : index
      %c0_40 = arith.constant 0 : index
      %57 = vector.load %arg8[%c0_39, %c0_40] : memref<4x128xf32, #tpu.memory_space<vmem>>, vector<4x128xf32>
      tpu.vector_store %arg8[%c0_39, %c0_40], %56 {strides = array<i32>} : memref<4x128xf32, #tpu.memory_space<vmem>>, vector<4x128xf32>,
      %cst_41 = arith.constant 0.000000e+00 : f32
      %58 = vector.broadcast %cst_41 : f32 to vector<4x128xf32>
      %c0_42 = arith.constant 0 : index
      %c0_43 = arith.constant 0 : index
      %59 = vector.load %arg9[%c0_42, %c0_43] : memref<4x128xf32, #tpu.memory_space<vmem>>, vector<4x128xf32>
      tpu.vector_store %arg9[%c0_42, %c0_43], %58 {strides = array<i32>} : memref<4x128xf32, #tpu.memory_space<vmem>>, vector<4x128xf32>,
    } else {
    }
    %c0 = arith.constant 0 : index
    %c0_1 = arith.constant 0 : index
    %c0_2 = arith.constant 0 : index
    %3 = vector.load %arg2[%c0, %c0_1, %c0_2] : memref<4x16x32xf32, #tpu.memory_space<vmem>>, vector<4x16x32xf32>
    %4 = vector.shape_cast %3 : vector<4x16x32xf32> to vector<64x32xf32>
    %c0_3 = arith.constant 0 : index
    %c0_4 = arith.constant 0 : index
    %c0_5 = arith.constant 0 : index
    %5 = vector.load %arg3[%c0_3, %c0_4, %c0_5] : memref<2x128x128xf32, #tpu.memory_space<vmem>>, vector<1x128x128xf32>
    %6 = vector.shape_cast %5 : vector<1x128x128xf32> to vector<128x128xf32>
    %c0_6 = arith.constant 0 : index
    %c0_7 = arith.constant 0 : index
    %7 = vector.load %arg4[%c0_6, %c0_7] : memref<2x128xf32, #tpu.memory_space<vmem>>, vector<1x128xf32>
    %8 = vector.extract_strided_slice %6 {offsets = [0, 0], sizes = [32, 128], strides = [1, 1]} : vector<128x128xf32> to vector<32x128xf32>
    %cst = arith.constant dense<0.000000e+00> : vector<64x128xf32>
    %9 = tpu.matmul %4, %8, %cst {dimension_numbers = #tpu.dot_dimension_numbers<[1], [0], [0], [1], [0, 0, 1, 1], [], []>} : vector<64x32xf32>, vector<32x128xf32>, vector<64x128xf32> -> vector<64x128xf32>
    %10 = vector.broadcast %7 : vector<1x128xf32> to vector<64x128xf32>
    %11 = arith.addf %9, %10 : vector<64x128xf32>
    %cst_8 = arith.constant 0.000000e+00 : f32
    %12 = vector.broadcast %cst_8 : f32 to vector<64x128xf32>
    %13 = arith.maximumf %11, %12 : vector<64x128xf32>
    %c1 = arith.constant 1 : index
    %c0_9 = arith.constant 0 : index
    %c0_10 = arith.constant 0 : index
    %14 = vector.load %arg3[%c1, %c0_9, %c0_10] : memref<2x128x128xf32, #tpu.memory_space<vmem>>, vector<1x128x128xf32>
    %15 = vector.shape_cast %14 : vector<1x128x128xf32> to vector<128x128xf32>
    %c1_11 = arith.constant 1 : index
    %c0_12 = arith.constant 0 : index
    %16 = vector.load %arg4[%c1_11, %c0_12] : memref<2x128xf32, #tpu.memory_space<vmem>>, vector<1x128xf32>
    %cst_13 = arith.constant dense<0.000000e+00> : vector<64x128xf32>
    %17 = tpu.matmul %13, %15, %cst_13 {dimension_numbers = #tpu.dot_dimension_numbers<[1], [0], [0], [1], [0, 0, 1, 1], [], []>} : vector<64x128xf32>, vector<128x128xf32>, vector<64x128xf32> -> vector<64x128xf32>
    %18 = vector.broadcast %16 : vector<1x128xf32> to vector<64x128xf32>
    %19 = arith.addf %17, %18 : vector<64x128xf32>
    %cst_14 = arith.constant 0.000000e+00 : f32
    %20 = vector.broadcast %cst_14 : f32 to vector<64x128xf32>
    %21 = arith.maximumf %19, %20 : vector<64x128xf32>
    %c0_15 = arith.constant 0 : index
    %c0_16 = arith.constant 0 : index
    %22 = vector.load %arg5[%c0_15, %c0_16] : memref<128x256xf32, #tpu.memory_space<vmem>>, vector<128x256xf32>
    %cst_17 = arith.constant dense<0.000000e+00> : vector<64x256xf32>
    %23 = tpu.matmul %21, %22, %cst_17 {dimension_numbers = #tpu.dot_dimension_numbers<[1], [0], [0], [1], [0, 0, 1, 1], [], []>} : vector<64x128xf32>, vector<128x256xf32>, vector<64x256xf32> -> vector<64x256xf32>
    %24 = vector.extract_strided_slice %22 {offsets = [0, 0], sizes = [32, 256], strides = [1, 1]} : vector<128x256xf32> to vector<32x256xf32>
    %cst_18 = arith.constant dense<0.000000e+00> : vector<64x256xf32>
    %25 = tpu.matmul %4, %24, %cst_18 {dimension_numbers = #tpu.dot_dimension_numbers<[1], [0], [0], [1], [0, 0, 1, 1], [], []>} : vector<64x32xf32>, vector<32x256xf32>, vector<64x256xf32> -> vector<64x256xf32>
    %26 = arith.addf %23, %25 : vector<64x256xf32>
    %c0_19 = arith.constant 0 : index
    %c0_20 = arith.constant 0 : index
    %27 = vector.load %arg6[%c0_19, %c0_20] : memref<1x256xf32, #tpu.memory_space<vmem>>, vector<1x256xf32>
    %28 = vector.broadcast %27 : vector<1x256xf32> to vector<64x256xf32>
    %29 = arith.addf %26, %28 : vector<64x256xf32>
    %cst_21 = arith.constant 5.000000e-01 : f32
    %30 = vector.broadcast %cst_21 : f32 to vector<64x256xf32>
    %31 = arith.mulf %30, %29 : vector<64x256xf32>
    %32 = math.tanh %31 : vector<64x256xf32>
    %cst_22 = arith.constant 5.000000e-01 : f32
    %33 = vector.broadcast %cst_22 : f32 to vector<64x256xf32>
    %34 = arith.mulf %33, %32 : vector<64x256xf32>
    %cst_23 = arith.constant 5.000000e-01 : f32
    %35 = vector.broadcast %cst_23 : f32 to vector<64x256xf32>
    %36 = arith.addf %34, %35 : vector<64x256xf32>
    %37 = vector.shape_cast %36 : vector<64x256xf32> to vector<4x16x256xf32>
    %38 = vector.extract_strided_slice %37 {offsets = [0, 0, 0], sizes = [4, 16, 128], strides = [1, 1, 1]} : vector<4x16x256xf32> to vector<4x16x128xf32>
    %cst_24 = arith.constant 1.000000e-07 : f32
    %cst_25 = arith.constant 0.99999988 : f32
    %39 = vector.broadcast %cst_24 : f32 to vector<4x16x128xf32>
    %40 = arith.maximumf %39, %38 : vector<4x16x128xf32>
    %41 = vector.broadcast %cst_25 : f32 to vector<4x16x128xf32>
    %42 = arith.minimumf %41, %40 : vector<4x16x128xf32>
    %43 = vector.extract_strided_slice %37 {offsets = [0, 0, 128], sizes = [4, 16, 128], strides = [1, 1, 1]} : vector<4x16x256xf32> to vector<4x16x128xf32>
    %c0_26 = arith.constant 0 : index
    %c0_27 = arith.constant 0 : index
    %44 = vector.load %arg8[%c0_26, %c0_27] : memref<4x128xf32, #tpu.memory_space<vmem>>, vector<4x128xf32>
    %45 = arith.mulf %42, %43 : vector<4x16x128xf32>
    %cst_28 = arith.constant dense<0.000000e+00> : vector<4x128xf32>
    %46 = vector.multi_reduction <add>, %45, %cst_28 [1] : vector<4x16x128xf32> to vector<4x128xf32>
    %47 = arith.addf %44, %46 : vector<4x128xf32>
    %c0_29 = arith.constant 0 : index
    %c0_30 = arith.constant 0 : index
    %48 = vector.load %arg8[%c0_29, %c0_30] : memref<4x128xf32, #tpu.memory_space<vmem>>, vector<4x128xf32>
    tpu.vector_store %arg8[%c0_29, %c0_30], %47 {strides = array<i32>} : memref<4x128xf32, #tpu.memory_space<vmem>>, vector<4x128xf32>,
    %c0_31 = arith.constant 0 : index
    %c0_32 = arith.constant 0 : index
    %49 = vector.load %arg9[%c0_31, %c0_32] : memref<4x128xf32, #tpu.memory_space<vmem>>, vector<4x128xf32>
    %cst_33 = arith.constant dense<0.000000e+00> : vector<4x128xf32>
    %50 = vector.multi_reduction <add>, %42, %cst_33 [1] : vector<4x16x128xf32> to vector<4x128xf32>
    %51 = arith.addf %49, %50 : vector<4x128xf32>
    %c0_34 = arith.constant 0 : index
    %c0_35 = arith.constant 0 : index
    %52 = vector.load %arg9[%c0_34, %c0_35] : memref<4x128xf32, #tpu.memory_space<vmem>>, vector<4x128xf32>
    tpu.vector_store %arg9[%c0_34, %c0_35], %51 {strides = array<i32>} : memref<4x128xf32, #tpu.memory_space<vmem>>, vector<4x128xf32>,
    %c0_i32_36 = arith.constant 0 : i32
    %53 = arith.cmpi eq, %arg1, %c0_i32_36 : i32
    %54 = arith.extui %53 : i1 to i32
    %c0_i32_37 = arith.constant 0 : i32
    %55 = arith.cmpi ne, %54, %c0_i32_37 : i32
    scf.if %55 {
      %c0_38 = arith.constant 0 : index
      %c0_39 = arith.constant 0 : index
      %56 = vector.load %arg8[%c0_38, %c0_39] : memref<4x128xf32, #tpu.memory_space<vmem>>, vector<4x128xf32>
      %c0_40 = arith.constant 0 : index
      %c0_41 = arith.constant 0 : index
      %57 = vector.load %arg9[%c0_40, %c0_41] : memref<4x128xf32, #tpu.memory_space<vmem>>, vector<4x128xf32>
      %58 = tpu.reciprocal %57 : vector<4x128xf32> -> vector<4x128xf32>
      %59 = arith.mulf %56, %58 : vector<4x128xf32>
      %cst_42 = arith.constant 0.000000e+00 : f32
      %cst_43 = arith.constant 1.000000e+00 : f32
      %60 = vector.broadcast %cst_42 : f32 to vector<4x128xf32>
      %61 = arith.maximumf %60, %59 : vector<4x128xf32>
      %62 = vector.broadcast %cst_43 : f32 to vector<4x128xf32>
      %63 = arith.minimumf %62, %61 : vector<4x128xf32>
      %c0_44 = arith.constant 0 : index
      %c0_45 = arith.constant 0 : index
      %c0_46 = arith.constant 0 : index
      %64 = vector.load %arg7[%c0_44, %c0_45, %c0_46] : memref<1x4x128xf32, #tpu.memory_space<vmem>>, vector<1x4x128xf32>
      %65 = vector.shape_cast %64 : vector<1x4x128xf32> to vector<4x128xf32>
      %66 = vector.shape_cast %63 : vector<4x128xf32> to vector<1x4x128xf32>
      tpu.vector_store %arg7[%c0_44, %c0_45, %c0_46], %66 {strides = array<i32>} : memref<1x4x128xf32, #tpu.memory_space<vmem>>, vector<1x4x128xf32>,
    } else {
    }
    return
  }
  func.func @transform_0(%arg0: i32, %arg1: i32) -> (i32, i32, i32) {
    %c0_i32 = arith.constant 0 : i32
    %c0_i32_0 = arith.constant 0 : i32
    return %arg0, %arg1, %c0_i32 : i32, i32, i32
  }
  func.func @transform_1(%arg0: i32, %arg1: i32) -> (i32, i32, i32) {
    %c0_i32 = arith.constant 0 : i32
    %c0_i32_0 = arith.constant 0 : i32
    %c0_i32_1 = arith.constant 0 : i32
    %c0_i32_2 = arith.constant 0 : i32
    return %c0_i32, %c0_i32_0, %c0_i32_1 : i32, i32, i32
  }
  func.func @transform_2(%arg0: i32, %arg1: i32) -> (i32, i32) {
    %c0_i32 = arith.constant 0 : i32
    %c0_i32_0 = arith.constant 0 : i32
    %c0_i32_1 = arith.constant 0 : i32
    return %c0_i32, %c0_i32_0 : i32, i32
  }
  func.func @transform_3(%arg0: i32, %arg1: i32) -> (i32, i32) {
    %c0_i32 = arith.constant 0 : i32
    %c0_i32_0 = arith.constant 0 : i32
    %c0_i32_1 = arith.constant 0 : i32
    return %c0_i32, %c0_i32_0 : i32, i32
  }
  func.func @transform_4(%arg0: i32, %arg1: i32) -> (i32, i32) {
    %c0_i32 = arith.constant 0 : i32
    %c0_i32_0 = arith.constant 0 : i32
    %c0_i32_1 = arith.constant 0 : i32
    return %c0_i32, %c0_i32_0 : i32, i32
  }
  func.func @transform_5(%arg0: i32, %arg1: i32) -> (i32, i32, i32) {
    %c0_i32 = arith.constant 0 : i32
    %c0_i32_0 = arith.constant 0 : i32
    %c0_i32_1 = arith.constant 0 : i32
    return %arg0, %c0_i32, %c0_i32_0 : i32, i32, i32
  }
}

</mosaic_0001>

<bundles_post_ra>
// kernel: tpu_custom_call.1
= control target key start
LH: loop header
LB: loop body
LE: loop exit
PB: predicated region body
PF: predicated region fallthrough
CT: control target
= control target key end

     0   :  { %10 = vsyncpa [#allocation5], 0  ;;  %s1381_s0 = inlined_call_operand.hbm [shape: f32[4,16,32], index: 0, kind: input, shape index: {}]   ;;  %s1382_s1 = inlined_call_operand.hbm [shape: f32[2,128,128], index: 1, kind: input, shape index: {}]   ;;  %s1383_s2 = inlined_call_operand.vmem [shape: f32[2,128], index: 2, kind: input, shape index: {}]   ;;  %s1384_s3 = inlined_call_operand.hbm [shape: f32[128,256], index: 3, kind: input, shape index: {}]   ;;  %s1385_s4 = inlined_call_operand.vmem [shape: f32[1,256], index: 4, kind: input, shape index: {}]   ;;  %s1386_s5 = inlined_call_operand.hbm [shape: f32[1,4,128], index: 5, kind: output, shape index: {}]  }
   0x1   :  { %11 = vsyncpa [#allocation8], 0 }
   0x2   :  { %12 = vsyncpa [#allocation6], 0  ;;  %s1190_s18 = smov [#allocation7]   ;;  %s1191_s20 = smov [#allocation4]  }
   0x3   :  { %s30_s19 = sshll.u32 %s1190_s18, 4  ;;  %s18_s21 = sshll.u32 %s1191_s20, 4  ;;  %s31_s19 = int_to_ptr.vmem [resolvable:$true] %s30_s19  ;;  %s1229_s21 = int_to_ptr.vmem [resolvable:$true] %s18_s21 }
   0x4   :  { %s1096_s24 = scalar_lea.hbm %s1382_s1, 4096 }
   0x5   :  { %p1097_p0 = scmp.ne.s32.totalorder %s1382_s1, %s1096_s24  ;;  %p1100_p1 = scmp.lt.u32.totalorder %s1096_s24, %s1382_s1 }
   0x7   :  { %p1102_p2 = pnand %p1100_p1, %p1097_p0 }
   0x9   :  { %1105 = shalt.err (!%p1102_p2)
}
   0xa   :  { %s1106_s29 = scalar_lea.vmem %s31_s19, 4096  ;;  %p1111_p4 = scmp.lt.s32.totalorder %s31_s19, %s31_s19 }
   0xb   :  { %p1107_p3 = scmp.ne.s32.totalorder %s31_s19, %s1106_s29  ;;  %p1112_p5 = scmp.lt.s32.totalorder %s1106_s29, %s1106_s29 }
   0xd   :  { %p1113_p6 = por %p1112_p5, %p1111_p4 }
   0xf   :  { %p1114_p7 = pnand %p1113_p6, %p1107_p3 }
  0x11   :  { %1117 = shalt.err (!%p1114_p7)
}
  0x12   :  { %s1192_s30 = smov 128   ;;  %s1193_s6 = smov 8  }
  0x13   :  { %36 = dma.hbm_to_vmem [thread:$0]  %s1382_s1, 4096, %s31_s19, [#allocation8], %s1192_s30, %s1192_s30, %s1193_s6  }
  0x14   :  { %s1118_s11 = scalar_lea.hbm %s1381_s0, 1024 }
  0x15   :  { %p1119_p8 = scmp.ne.s32.totalorder %s1381_s0, %s1118_s11  ;;  %p1122_p9 = scmp.lt.u32.totalorder %s1118_s11, %s1381_s0 }
  0x17   :  { %p1124_p10 = pnand %p1122_p9, %p1119_p8 }
  0x19   :  { %1127 = shalt.err (!%p1124_p10)
}
  0x1a   :  { %s1128_s16 = scalar_lea.vmem %s1229_s21, 1024  ;;  %p1133_p12 = scmp.lt.s32.totalorder %s1229_s21, %s1229_s21 }
  0x1b   :  { %p1129_p11 = scmp.ne.s32.totalorder %s1229_s21, %s1128_s16  ;;  %p1134_p13 = scmp.lt.s32.totalorder %s1128_s16, %s1128_s16 }
  0x1d   :  { %p1135_p0 = por %p1134_p13, %p1133_p12 }
  0x1f   :  { %p1136_p1 = pnand %p1135_p0, %p1129_p11 }
  0x21   :  { %1139 = shalt.err (!%p1136_p1)
}
  0x22   :  { %24 = dma.hbm_to_vmem [thread:$0]  %s1381_s0, 1024, %s1229_s21, [#allocation5], %s1192_s30, %s1192_s30, %s1193_s6  }
  0x23   :  { %s1194_s18 = smov [#allocation9]   ;;  %s1140_s23 = scalar_lea.hbm %s1384_s3, 4096 }
  0x24   :  { %s44_s19 = sshll.u32 %s1194_s18, 4  ;;  %p1141_p2 = scmp.ne.s32.totalorder %s1384_s3, %s1140_s23  ;;  %s45_s19 = int_to_ptr.vmem [resolvable:$true] %s44_s19 }
  0x25   :  { %p1144_p3 = scmp.lt.u32.totalorder %s1140_s23, %s1384_s3 }
  0x27   :  { %p1146_p4 = pnand %p1144_p3, %p1141_p2 }
  0x29   :  { %1149 = shalt.err (!%p1146_p4)
}
  0x2a   :  { %s1150_s28 = scalar_lea.vmem %s45_s19, 4096  ;;  %p1155_p6 = scmp.lt.s32.totalorder %s45_s19, %s45_s19 }
  0x2b   :  { %p1151_p5 = scmp.ne.s32.totalorder %s45_s19, %s1150_s28  ;;  %p1156_p7 = scmp.lt.s32.totalorder %s1150_s28, %s1150_s28 }
  0x2d   :  { %p1157_p8 = por %p1156_p7, %p1155_p6 }
  0x2f   :  { %p1158_p9 = pnand %p1157_p8, %p1151_p5 }
  0x31   :  { %1161 = shalt.err (!%p1158_p9)
}
  0x32   :  { %s1195_s0 = smov 256   ;;  %s1196_s21 = smov 16  }
  0x33   :  { %50 = dma.hbm_to_vmem [thread:$0]  %s1384_s3, 4096, %s45_s19, [#allocation8], %s1195_s0, %s1195_s0, %s1196_s21  }
  0x34   :  { %1184 = dma.done.wait [#allocation5], 1024  }
  0x35   :  { %1185 = vsyncadd [#allocation5], 4294966272 }
  0x36   :  { %1186 = dma.done.wait [#allocation8], 8192  }
  0x37   :  { %1187 = vsyncadd [#allocation8], 4294959104  ;;  %vm85_vm0 = vcmask 261120   ;;  %v76_v0 = vld [vmem:[#allocation7] sm:$0xff]  ;;  %v77_v1 = vld [vmem:[#allocation7 + $0x8] sm:$0xff]  ;;  %v1197_v45 = vmov 0.0  }
  0x38   :  { %v78_v2 = vld [vmem:[#allocation7 + $0x10] sm:$0xff]  ;;  %v957_v3 = vpack.c.bf16 %v77_v1, %v76_v0  ;;  %v79_v4 = vld [vmem:[#allocation7 + $0x18] sm:$0xff]  ;;  %v1272_v5 = vld [vmem:[#allocation4] sm:$0xff]  ;;  %454 = vmatprep.mubr.f32.mxu0 %v1197_v45  ;;  %66 = vst [vmem:[#allocation2] sm:$0xf] %v1197_v45  ;;  %vm765_vm1 = vcmask 1041409  }
  0x39   :  { %v961_v6 = vpack.c.bf16 %v79_v4, %v78_v2  ;;  %901 = vmatprep.mubr.msk.f32.mxu1 %vm85_vm0, %v1272_v5  ;;  %v224_v7 = vld [vmem:[#allocation7 + $0x80] sm:$0xff]  ;;  %v225_v8 = vld [vmem:[#allocation7 + $0x88] sm:$0xff]  ;;  %v226_v10 = vld [vmem:[#allocation7 + $0x90] sm:$0xff]  ;;  %67 = vst [vmem:[#allocation3] sm:$0xf] %v1197_v45  ;;  %vm767_vm2 = vcmask 1042434  }
  0x3a   :  { %958 = vmatprep.subr.bf16.mxu1 %v957_v3  ;;  %v965_v9 = vpack.c.bf16 %v225_v8, %v224_v7  ;;  %v227_v11 = vld [vmem:[#allocation7 + $0x98] sm:$0xff]  ;;  %v1276_v12 = vld [vmem:[#allocation4 + $0x8] sm:$0xff]  ;;  %v1278_v13 = vld [vmem:[#allocation4 + $0x10] sm:$0xff]  ;;  %vm769_vm3 = vcmask 1043459  }
  0x3b   :  { %960 = vmatpush3.bf16.msra.mxu1 %v957_v3  ;;  %v969_v14 = vpack.c.bf16 %v227_v11, %v226_v10  ;;  %v228_v15 = vld [vmem:[#allocation7 + $0xa0] sm:$0xff]  ;;  %v229_v16 = vld [vmem:[#allocation7 + $0xa8] sm:$0xff]  ;;  %v1284_v17 = vld [vmem:[#allocation4 + $0x18] sm:$0xff] }
  0x3c   :  { %962 = vmatprep.subr.bf16.mxu1 %v961_v6  ;;  %v1286_v18 = vld [vmem:[#allocation4 + $0x20] sm:$0xff]  ;;  %v973_v19 = vpack.c.bf16 %v229_v16, %v228_v15  ;;  %v230_v20 = vld [vmem:[#allocation7 + $0xb0] sm:$0xff]  ;;  %v231_v21 = vld [vmem:[#allocation7 + $0xb8] sm:$0xff] }
  0x3d   :  { %v1292_v22 = vld [vmem:[#allocation4 + $0x28] sm:$0xff]  ;;  %v1294_v23 = vld [vmem:[#allocation4 + $0x30] sm:$0xff]  ;;  %v977_v24 = vpack.c.bf16 %v231_v21, %v230_v20  ;;  %v232_v25 = vld [vmem:[#allocation7 + $0xc0] sm:$0xff] }
  0x3e   :  { %v233_v26 = vld [vmem:[#allocation7 + $0xc8] sm:$0xff]  ;;  %v1300_v27 = vld [vmem:[#allocation4 + $0x38] sm:$0xff]  ;;  %v234_v29 = vld [vmem:[#allocation7 + $0xd0] sm:$0xff] }
  0x3f   :  { %964 = vmatpush3.bf16.msra.mxu1 %v961_v6  ;;  %v981_v28 = vpack.c.bf16 %v233_v26, %v232_v25  ;;  %v235_v30 = vld [vmem:[#allocation7 + $0xd8] sm:$0xff]  ;;  %v236_v32 = vld [vmem:[#allocation7 + $0xe0] sm:$0xff]  ;;  %v237_v33 = vld [vmem:[#allocation7 + $0xe8] sm:$0xff] }
  0x40   :  { %966 = vmatprep.subr.bf16.mxu1 %v965_v9  ;;  %v985_v31 = vpack.c.bf16 %v235_v30, %v234_v29  ;;  %v989_v34 = vpack.c.bf16 %v237_v33, %v236_v32  ;;  %v238_v35 = vld [vmem:[#allocation7 + $0xf0] sm:$0xff]  ;;  %v239_v36 = vld [vmem:[#allocation7 + $0xf8] sm:$0xff]  ;;  %v359_v38 = vld [vmem:[#allocation9 + $0x8] sm:$0xff] }
  0x41   :  { %v993_v37 = vpack.c.bf16 %v239_v36, %v238_v35  ;;  %v361_v39 = vld [vmem:[#allocation9 + $0x18] sm:$0xff]  ;;  %v358_v40 = vld [vmem:[#allocation9] sm:$0xff]  ;;  %v360_v42 = vld [vmem:[#allocation9 + $0x10] sm:$0xff] }
  0x42   :  { %902 = vmatmul.mubr.msk.f32.vlgmr.msra.gmra.mrb[0].mxu1 %vm85_vm0, %v1276_v12  ;;  %v997_v41 = vpack.c.bf16 %v361_v39, %v359_v38  ;;  %v363_v43 = vld [vmem:[#allocation9 + $0x28] sm:$0xff]  ;;  %v365_v44 = vld [vmem:[#allocation9 + $0x38] sm:$0xff]  ;;  %v999_v46 = vpack.c.bf16 %v360_v42, %v358_v40  ;;  %v362_v48 = vld [vmem:[#allocation9 + $0x20] sm:$0xff] }
  0x43   :  { %904 = vmatprep.mubr.msk.f32.mxu1 %vm85_vm0, %v1278_v13  ;;  %968 = vmatpush3.bf16.msra.mxu1 %v965_v9  ;;  %v1001_v47 = vpack.c.bf16 %v365_v44, %v363_v43  ;;  %v364_v49 = vld [vmem:[#allocation9 + $0x30] sm:$0xff]  ;;  %v367_v51 = vld [vmem:[#allocation9 + $0x48] sm:$0xff]  ;;  %v369_v52 = vld [vmem:[#allocation9 + $0x58] sm:$0xff] }
  0x44   :  { %970 = vmatprep.subr.bf16.mxu1 %v969_v14  ;;  %998 = vmatprep.subr.bf16.mxu0 %v997_v41  ;;  %v1003_v50 = vpack.c.bf16 %v364_v49, %v362_v48  ;;  %v1013_v53 = vpack.c.bf16 %v369_v52, %v367_v51  ;;  %v366_v54 = vld [vmem:[#allocation9 + $0x40] sm:$0xff]  ;;  %v368_v55 = vld [vmem:[#allocation9 + $0x50] sm:$0xff]  ;;  %v371_v56 = vld [vmem:[#allocation9 + $0x68] sm:$0xff] }
  0x45   :  { %1000 = vmatpush1.bf16.msra.mxu0 %v999_v46  ;;  %v373_v57 = vld [vmem:[#allocation9 + $0x78] sm:$0xff]  ;;  %v1015_v58 = vpack.c.bf16 %v368_v55, %v366_v54  ;;  %v370_v60 = vld [vmem:[#allocation9 + $0x60] sm:$0xff]  ;;  %v372_v61 = vld [vmem:[#allocation9 + $0x70] sm:$0xff] }
  0x46   :  { %905 = vmatmul.mubr.msk.f32.gmra.mrb[2].mxu1 %vm85_vm0, %v1284_v17  ;;  %1002 = vmatprep.subr.bf16.mxu0 %v1001_v47  ;;  %v1017_v59 = vpack.c.bf16 %v373_v57, %v371_v56  ;;  %v375_v62 = vld [vmem:[#allocation9 + $0x88] sm:$0xff]  ;;  %v377_v63 = vld [vmem:[#allocation9 + $0x98] sm:$0xff]  ;;  %v1019_v0 = vpack.c.bf16 %v372_v61, %v370_v60  ;;  %v374_v2 = vld [vmem:[#allocation9 + $0x80] sm:$0xff] }
  0x47   :  { %907 = vmatprep.mubr.msk.f32.mxu1 %vm85_vm0, %v1286_v18  ;;  %972 = vmatpush3.bf16.msra.mxu1 %v969_v14  ;;  %v1021_v1 = vpack.c.bf16 %v377_v63, %v375_v62  ;;  %v376_v3 = vld [vmem:[#allocation9 + $0x90] sm:$0xff]  ;;  %v379_v4 = vld [vmem:[#allocation9 + $0xa8] sm:$0xff]  ;;  %v378_v8 = vld [vmem:[#allocation9 + $0xa0] sm:$0xff] }
  0x48   :  { %974 = vmatprep.subr.bf16.mxu1 %v973_v19  ;;  %v1023_v6 = vpack.c.bf16 %v376_v3, %v374_v2  ;;  %v380_v9 = vld [vmem:[#allocation9 + $0xb0] sm:$0xff]  ;;  %v383_v10 = vld [vmem:[#allocation9 + $0xc8] sm:$0xff]  ;;  %v385_v11 = vld [vmem:[#allocation9 + $0xd8] sm:$0xff] }
  0x49   :  { %1004 = vmatpush1.bf16.msra.mxu0 %v1003_v50  ;;  %v382_v14 = vld [vmem:[#allocation9 + $0xc0] sm:$0xff]  ;;  %v384_v15 = vld [vmem:[#allocation9 + $0xd0] sm:$0xff]  ;;  %v387_v42 = vld [vmem:[#allocation9 + $0xe8] sm:$0xff] }
  0x4a   :  { %908 = vmatmul.mubr.msk.f32.gmra.mrb[4].mxu1 %vm85_vm0, %v1292_v22  ;;  %1006 = vmatprep.subr.bf16.mxu0 %v997_v41  ;;  %v1031_v16 = vpack.c.bf16 %v384_v15, %v382_v14  ;;  %v389_v43 = vld [vmem:[#allocation9 + $0xf8] sm:$0xff] }
  0x4b   :  { %910 = vmatprep.mubr.msk.f32.mxu1 %vm85_vm0, %v1294_v23  ;;  %976 = vmatpush3.bf16.msra.mxu1 %v973_v19  ;;  %v1033_v44 = vpack.c.bf16 %v389_v43, %v387_v42  ;;  %v848_v49 = vld [vmem:[%s1383_s2 + $0x1] ss:$0 sm:$0xff] }
  0x4c   :  { %978 = vmatprep.subr.bf16.mxu1 %v977_v24  ;;  %849 = vmatmul.mubr.msk.f32.vlgmr.msra.gmra.mrb[0].mxu0 %vm85_vm0, %v1272_v5  ;;  %v381_v5 = vld [vmem:[#allocation9 + $0xb8] sm:$0xff] }
  0x4d   :  { %1008 = vmatpush1.bf16.msra.mxu0 %v999_v46  ;;  %460 = vmatprep.mubr.f32.mxu0 %v1197_v45  ;;  %v1025_v7 = vpack.c.bf16 %v381_v5, %v379_v4  ;;  %v386_v46 = vld [vmem:[#allocation9 + $0xe0] sm:$0xff] }
  0x4e   :  { %911 = vmatmul.mubr.msk.f32.gmra.mrb[6].mxu1 %vm85_vm0, %v1300_v27  ;;  %1010 = vmatprep.subr.bf16.mxu0 %v1001_v47  ;;  %v388_v47 = vld [vmem:[#allocation9 + $0xf0] sm:$0xff] }
  0x4f   :  { %980 = vmatpush3.bf16.msra.mxu1 %v977_v24  ;;  %v1035_v48 = vpack.c.bf16 %v388_v47, %v386_v46 }
  0x50   :  { %982 = vmatprep.subr.bf16.mxu1 %v981_v28  ;;  %850 = vmatmul.mubr.msk.f32.gmra.mrb[2].mxu0 %vm85_vm0, %v1276_v12  ;;  %v1027_v12 = vpack.c.bf16 %v380_v9, %v378_v8 }
  0x51   :  { %1012 = vmatpush1.bf16.msra.mxu0 %v1003_v50  ;;  %466 = vmatprep.mubr.f32.mxu0 %v1197_v45 }
  0x52   :  { %1014 = vmatprep.subr.bf16.mxu0 %v1013_v53 }
  0x53   :  { %984 = vmatpush3.bf16.msra.mxu1 %v981_v28 }
  0x54   :  { %986 = vmatprep.subr.bf16.mxu1 %v985_v31  ;;  %851 = vmatmul.mubr.msk.f32.gmra.mrb[4].mxu0 %vm85_vm0, %v1278_v13  ;;  %v1029_v13 = vpack.c.bf16 %v385_v11, %v383_v10  ;;  %v618_v10 = vlaneseq }
  0x55   :  { %1016 = vmatpush1.bf16.msra.mxu0 %v1015_v58  ;;  %472 = vmatprep.mubr.f32.mxu0 %v1197_v45 }
  0x56   :  { %1018 = vmatprep.subr.bf16.mxu0 %v1017_v59  ;;  %v619_v11 = vshrl.u32 %v618_v10, 7 }
  0x57   :  { %988 = vmatpush3.bf16.msra.mxu1 %v985_v31 }
  0x58   :  { %990 = vmatprep.subr.bf16.mxu1 %v989_v34  ;;  %852 = vmatmul.mubr.msk.f32.gmra.mrb[6].mxu0 %vm85_vm0, %v1284_v17  ;;  %v839_v17 = vld [vmem:[%s1383_s2] ss:$0 sm:$0xff]  ;;  %v624_v14 = vsub.s32 1, %v619_v11 }
  0x59   :  { %1020 = vmatpush1.bf16.msra.mxu0 %v1019_v0  ;;  %478 = vmatprep.mubr.f32.mxu0 %v1197_v45 }
  0x5a   :  { %1022 = vmatprep.subr.bf16.mxu0 %v1021_v1 }
  0x5b   :  { %992 = vmatpush3.bf16.msra.mxu1 %v989_v34 }
  0x5c   :  { %994 = vmatprep.subr.bf16.mxu1 %v993_v37  ;;  %853 = vmatmul.mubr.msk.f32.gmra.mrb[8].mxu0 %vm85_vm0, %v1286_v18 }
  0x5d   :  { %1024 = vmatpush1.bf16.msra.mxu0 %v1023_v6  ;;  %484 = vmatprep.mubr.f32.mxu0 %v1197_v45 }
  0x5e   :  { %1026 = vmatprep.subr.bf16.mxu0 %v1025_v7 }
  0x5f   :  { %996 = vmatpush3.bf16.msra.mxu1 %v993_v37 }
  0x60   :  { %854 = vmatmul.mubr.msk.f32.gmra.mrb[10].mxu0 %vm85_vm0, %v1292_v22 }
  0x61   :  { %1028 = vmatpush1.bf16.msra.mxu0 %v1027_v12  ;;  %490 = vmatprep.mubr.f32.mxu0 %v1197_v45  ;;  %v620_v12 = vsub.s32 0, %v619_v11 }
  0x62   :  { %1030 = vmatprep.subr.bf16.mxu0 %v1029_v13  ;;  %v616_v13 = vld [vmem:[%s1385_s4] sm:$0x3]  ;;  %s1198_s4 = smov [#allocation10]  }
  0x63   :  { %v1347_v15 = vrot.slane %v616_v13, %v620_v12  ;;  %s829_s10 = sshll.u32 %s1198_s4, 4  ;;  %s830_s10 = int_to_ptr.vmem [resolvable:$true] %s829_s10 }
  0x64   :  { %855 = vmatmul.mubr.msk.f32.gmra.mrb[12].mxu0 %vm85_vm0, %v1294_v23  ;;  %s1162_s11 = scalar_lea.vmem %s830_s10, 64  ;;  %p1167_p11 = scmp.lt.s32.totalorder %s830_s10, %s830_s10 }
  0x65   :  { %1032 = vmatpush1.bf16.msra.mxu0 %v1031_v16  ;;  %496 = vmatprep.mubr.f32.mxu0 %v1197_v45  ;;  %v1349_v16 = vrot.slane %v616_v13, %v624_v14  ;;  %p1163_p10 = scmp.ne.s32.totalorder %s830_s10, %s1162_s11  ;;  %p1168_p12 = scmp.lt.s32.totalorder %s1162_s11, %s1162_s11 }
  0x66   :  { %1034 = vmatprep.subr.bf16.mxu0 %v1033_v44 }
  0x67   :  { %p1169_p13 = por %p1168_p12, %p1167_p11 }
  0x68   :  { %856 = vmatmul.mubr.msk.f32.gmra.mrb[14].mxu0 %vm85_vm0, %v1300_v27 }
  0x69   :  { %567 = vmatprep.mubr.f32.mxu0 %v1197_v45  ;;  %1036 = vmatpush1.bf16.msra.mxu0 %v1035_v48  ;;  %p1170_p0 = pnand %p1169_p13, %p1163_p10 }
 0x115   :  { %v903_v18 = vpop.f32.mrb[0].mxu1 }
 0x116   :  { %v182_v19 = vadd.f32 %v903_v18, %v839_v17  ;;  %v176_v20 = vpop.f32.mrb[1].mxu1 }
 0x117   :  { %v177_v21 = vadd.f32 %v839_v17, %v176_v20 }
 0x118   :  { %v216_v25 = vmax.f32 %v182_v19, 0.0 }
 0x119   :  { %v215_v22 = vmax.f32 %v177_v21, 0.0  ;;  %v906_v24 = vpop.f32.mrb[2].mxu1 }
 0x11a   :  { %v192_v23 = vadd.f32 %v906_v24, %v839_v17  ;;  %v186_v26 = vpop.f32.mrb[3].mxu1 }
 0x11b   :  { %v187_v28 = vadd.f32 %v839_v17, %v186_v26  ;;  %945 = vmatprep.mubr.f32.mxu1 %v215_v22 }
 0x11c   :  { %v218_v29 = vmax.f32 %v192_v23, 0.0  ;;  %946 = vmatmul.mubr.f32.vlgmr.msra.gmra.mrb[8].mxu1 %v216_v25 }
 0x11d   :  { %v217_v27 = vmax.f32 %v187_v28, 0.0  ;;  %v909_v30 = vpop.f32.mrb[4].mxu1 }
 0x11e   :  { %v202_v31 = vadd.f32 %v909_v30, %v839_v17  ;;  %v196_v32 = vpop.f32.mrb[5].mxu1 }
 0x11f   :  { %948 = vmatprep.mubr.f32.mxu1 %v217_v27  ;;  %v197_v33 = vadd.f32 %v839_v17, %v196_v32 }
 0x120   :  { %949 = vmatmul.mubr.f32.gmra.mrb[10].mxu1 %v218_v29  ;;  %v220_v34 = vmax.f32 %v202_v31, 0.0 }
 0x121   :  { %v219_v35 = vmax.f32 %v197_v33, 0.0  ;;  %v912_v36 = vpop.f32.mrb[6].mxu1 }
 0x122   :  { %v212_v37 = vadd.f32 %v912_v36, %v839_v17  ;;  %v206_v38 = vpop.f32.mrb[7].mxu1 }
 0x123   :  { %951 = vmatprep.mubr.f32.mxu1 %v219_v35  ;;  %v207_v39 = vadd.f32 %v839_v17, %v206_v38 }
 0x124   :  { %952 = vmatmul.mubr.f32.gmra.mrb[12].mxu1 %v220_v34  ;;  %v222_v40 = vmax.f32 %v212_v37, 0.0 }
 0x125   :  { %v221_v41 = vmax.f32 %v207_v39, 0.0 }
 0x127   :  { %954 = vmatprep.mubr.f32.mxu1 %v221_v41 }
 0x128   :  { %955 = vmatmul.mubr.f32.gmra.mrb[14].mxu1 %v222_v40 }
 0x1ef   :  { %v947_v50 = vpop.f32.mrb[8].mxu1 }
 0x1f0   :  { %v311_v51 = vpop.f32.mrb[9].mxu1  ;;  %v317_v53 = vadd.f32 %v947_v50, %v848_v49 }
 0x1f1   :  { %v312_v52 = vadd.f32 %v848_v49, %v311_v51 }
 0x1f2   :  { %v351_v57 = vmax.f32 %v317_v53, 0.0 }
 0x1f3   :  { %v350_v54 = vmax.f32 %v312_v52, 0.0  ;;  %v950_v55 = vpop.f32.mrb[10].mxu1 }
 0x1f4   :  { %v321_v56 = vpop.f32.mrb[11].mxu1  ;;  %v327_v61 = vadd.f32 %v950_v55, %v848_v49 }
 0x1f5   :  { %568 = vmatmul.mubr.f32.vlgmr.msra.gmra.mrb[0].mxu0 %v350_v54  ;;  %v322_v58 = vadd.f32 %v848_v49, %v321_v56 }
 0x1f6   :  { %573 = vmatprep.mubr.f32.mxu0 %v1197_v45  ;;  %v353_v1 = vmax.f32 %v327_v61, 0.0 }
 0x1f7   :  { %v953_v59 = vpop.f32.mrb[12].mxu1  ;;  %v352_v62 = vmax.f32 %v322_v58, 0.0 }
 0x1f8   :  { %v331_v60 = vpop.f32.mrb[13].mxu1  ;;  %v337_v3 = vadd.f32 %v953_v59, %v848_v49 }
 0x1f9   :  { %574 = vmatmul.mubr.f32.gmra.mrb[2].mxu0 %v351_v57  ;;  %v332_v2 = vadd.f32 %v848_v49, %v331_v60 }
 0x1fa   :  { %579 = vmatprep.mubr.f32.mxu0 %v1197_v45  ;;  %v355_v5 = vmax.f32 %v337_v3, 0.0 }
 0x1fb   :  { %v956_v63 = vpop.f32.mrb[14].mxu1  ;;  %v354_v4 = vmax.f32 %v332_v2, 0.0 }
 0x1fc   :  { %v341_v0 = vpop.f32.mrb[15].mxu1  ;;  %v347_v7 = vadd.f32 %v956_v63, %v848_v49 }
 0x1fd   :  { %580 = vmatmul.mubr.f32.gmra.mrb[4].mxu0 %v352_v62  ;;  %v342_v6 = vadd.f32 %v848_v49, %v341_v0 }
 0x1fe   :  { %585 = vmatprep.mubr.f32.mxu0 %v1197_v45  ;;  %v357_v9 = vmax.f32 %v347_v7, 0.0 }
 0x1ff   :  { %v356_v8 = vmax.f32 %v342_v6, 0.0 }
 0x201   :  { %586 = vmatmul.mubr.f32.gmra.mrb[6].mxu0 %v353_v1 }
 0x202   :  { %591 = vmatprep.mubr.f32.mxu0 %v1197_v45 }
 0x205   :  { %592 = vmatmul.mubr.f32.gmra.mrb[8].mxu0 %v354_v4 }
 0x206   :  { %597 = vmatprep.mubr.f32.mxu0 %v1197_v45 }
 0x209   :  { %598 = vmatmul.mubr.f32.gmra.mrb[10].mxu0 %v355_v5 }
 0x20a   :  { %603 = vmatprep.mubr.f32.mxu0 %v1197_v45 }
 0x20d   :  { %604 = vmatmul.mubr.f32.gmra.mrb[12].mxu0 %v356_v8 }
 0x20e   :  { %609 = vmatprep.mubr.f32.mxu0 %v1197_v45 }
 0x211   :  { %610 = vmatmul.mubr.f32.gmra.mrb[14].mxu0 %v357_v9 }
 0x2c8   :  { %v569_v17 = vpop.f32.mrb[0].mxu0 }
 0x2c9   :  { %v628_v18 = vadd.f32 %v1347_v15, %v569_v17  ;;  %v571_v19 = vpop.f32.mrb[1].mxu0 }
 0x2ca   :  { %v629_v45 = vadd.f32 %v1349_v16, %v571_v19 }
 0x2cb   :  { %v644_v20 = vmul.f32 0.5, %v628_v18 }
 0x2cc   :  { %v645_v21 = vmul.f32 0.5, %v629_v45  ;;  %v575_v22 = vpop.f32.mrb[2].mxu0 }
 0x2cd   :  { %1062 = vtanh.f32 %v644_v20  ;;  %v630_v24 = vadd.f32 %v1347_v15, %v575_v22  ;;  %v577_v25 = vpop.f32.mrb[3].mxu0 }
 0x2ce   :  { %1064 = vtanh.f32 %v645_v21  ;;  %v631_v23 = vadd.f32 %v1349_v16, %v577_v25 }
 0x2cf   :  { %v646_v26 = vmul.f32 0.5, %v630_v24 }
 0x2d0   :  { %v647_v28 = vmul.f32 0.5, %v631_v23  ;;  %v581_v29 = vpop.f32.mrb[4].mxu0 }
 0x2d1   :  { %1066 = vtanh.f32 %v646_v26  ;;  %v632_v27 = vadd.f32 %v1347_v15, %v581_v29  ;;  %v583_v30 = vpop.f32.mrb[5].mxu0 }
 0x2d2   :  { %1068 = vtanh.f32 %v647_v28  ;;  %v633_v31 = vadd.f32 %v1349_v16, %v583_v30 }
 0x2d3   :  { %v648_v32 = vmul.f32 0.5, %v632_v27 }
 0x2d4   :  { %v649_v33 = vmul.f32 0.5, %v633_v31  ;;  %v587_v34 = vpop.f32.mrb[6].mxu0 }
 0x2d5   :  { %1070 = vtanh.f32 %v648_v32  ;;  %v634_v35 = vadd.f32 %v1347_v15, %v587_v34  ;;  %v589_v36 = vpop.f32.mrb[7].mxu0 }
 0x2d6   :  { %1072 = vtanh.f32 %v649_v33  ;;  %v635_v37 = vadd.f32 %v1349_v16, %v589_v36 }
 0x2d7   :  { %v1063_v38 = vpop.eup %1062  ;;  %v650_v39 = vmul.f32 0.5, %v634_v35 }
 0x2d8   :  { %v1065_v40 = vpop.eup %1064  ;;  %v676_v41 = vmul.f32 0.5, %v1063_v38  ;;  %v651_v42 = vmul.f32 0.5, %v635_v37  ;;  %v593_v43 = vpop.f32.mrb[8].mxu0 }
 0x2d9   :  { %v677_v44 = vmul.f32 0.5, %v1065_v40  ;;  %1074 = vtanh.f32 %v650_v39  ;;  %v636_v46 = vadd.f32 %v1347_v15, %v593_v43  ;;  %v595_v47 = vpop.f32.mrb[9].mxu0 }
 0x2da   :  { %v692_v48 = vadd.f32 0.5, %v676_v41  ;;  %1076 = vtanh.f32 %v651_v42  ;;  %v637_v49 = vadd.f32 %v1349_v16, %v595_v47 }
 0x2db   :  { %v1067_v50 = vpop.eup %1066  ;;  %v652_v51 = vmul.f32 0.5, %v636_v46  ;;  %v693_v57 = vadd.f32 0.5, %v677_v44 }
 0x2dc   :  { %v1069_v52 = vpop.eup %1068  ;;  %v708_v53 = vmax.f32 %v692_v48, 1e-07  ;;  %v678_v54 = vmul.f32 0.5, %v1067_v50  ;;  %v653_v55 = vmul.f32 0.5, %v637_v49  ;;  %v599_v56 = vpop.f32.mrb[10].mxu0 }
 0x2dd   :  { %v679_v58 = vmul.f32 0.5, %v1069_v52  ;;  %1078 = vtanh.f32 %v652_v51  ;;  %v638_v59 = vadd.f32 %v1347_v15, %v599_v56  ;;  %v601_v60 = vpop.f32.mrb[11].mxu0 }
 0x2de   :  { %v716_v61 = vmin.f32 %v708_v53, 0.9999999  ;;  %v694_v62 = vadd.f32 0.5, %v678_v54  ;;  %1080 = vtanh.f32 %v653_v55  ;;  %v639_v63 = vadd.f32 %v1349_v16, %v601_v60 }
 0x2df   :  { %v1071_v0 = vpop.eup %1070  ;;  %v654_v1 = vmul.f32 0.5, %v638_v59  ;;  %v695_v8 = vadd.f32 0.5, %v679_v58 }
 0x2e0   :  { %v1073_v2 = vpop.eup %1072  ;;  %v725_v3 = vmul.f32 %v716_v61, %v693_v57  ;;  %v709_v4 = vmax.f32 %v694_v62, 1e-07  ;;  %v680_v5 = vmul.f32 0.5, %v1071_v0  ;;  %v655_v6 = vmul.f32 0.5, %v639_v63  ;;  %v605_v7 = vpop.f32.mrb[12].mxu0 }
 0x2e1   :  { %v681_v9 = vmul.f32 0.5, %v1073_v2  ;;  %1082 = vtanh.f32 %v654_v1  ;;  %v640_v10 = vadd.f32 %v1347_v15, %v605_v7  ;;  %v607_v11 = vpop.f32.mrb[13].mxu0 }
 0x2e2   :  { %v717_v12 = vmin.f32 %v709_v4, 0.9999999  ;;  %v696_v13 = vadd.f32 0.5, %v680_v5  ;;  %1084 = vtanh.f32 %v655_v6  ;;  %v641_v14 = vadd.f32 %v1349_v16, %v607_v11 }
 0x2e3   :  { %v1075_v17 = vpop.eup %1074  ;;  %v697_v18 = vadd.f32 0.5, %v681_v9  ;;  %v656_v19 = vmul.f32 0.5, %v640_v10 }
 0x2e4   :  { %v1077_v45 = vpop.eup %1076  ;;  %v775_v20 = vadd.f32 %v717_v12, %v716_v61  ;;  %v726_v21 = vmul.f32 %v717_v12, %v695_v8  ;;  %v710_v22 = vmax.f32 %v696_v13, 1e-07  ;;  %v682_v24 = vmul.f32 0.5, %v1075_v17  ;;  %v611_v25 = vpop.f32.mrb[14].mxu0 }
 0x2e5   :  { %v683_v23 = vmul.f32 0.5, %v1077_v45  ;;  %1086 = vtanh.f32 %v656_v19  ;;  %v657_v26 = vmul.f32 0.5, %v641_v14  ;;  %v642_v28 = vadd.f32 %v1347_v15, %v611_v25  ;;  %v613_v29 = vpop.f32.mrb[15].mxu0 }
 0x2e6   :  { %v776_v27 = vrot.slane %v775_v20, 4  ;;  %v733_v30 = vadd.f32 %v726_v21, %v725_v3  ;;  %v718_v31 = vmin.f32 %v710_v22, 0.9999999  ;;  %v698_v32 = vadd.f32 0.5, %v682_v24 }
 0x2e7   :  { %v1079_v33 = vpop.eup %1078  ;;  %1088 = vtanh.f32 %v657_v26  ;;  %v658_v34 = vmul.f32 0.5, %v642_v28  ;;  %v643_v35 = vadd.f32 %v1349_v16, %v613_v29  ;;  %v699_v44 = vadd.f32 0.5, %v683_v23 }
 0x2e8   :  { %v1081_v36 = vpop.eup %1080  ;;  %v777_v37 = vadd.f32 %v776_v27, %v775_v20  ;;  %v734_v38 = vrot.slane %v733_v30, 4  ;;  %v727_v39 = vmul.f32 %v718_v31, %v697_v18  ;;  %v711_v40 = vmax.f32 %v698_v32, 1e-07 }
 0x2e9   :  { %v684_v41 = vmul.f32 0.5, %v1079_v33  ;;  %1090 = vtanh.f32 %v658_v34  ;;  %v659_v42 = vmul.f32 0.5, %v643_v35  ;;  %v685_v48 = vmul.f32 0.5, %v1081_v36 }
 0x2ea   :  { %v735_v43 = vadd.f32 %v734_v38, %v733_v30  ;;  %v719_v15 = vmin.f32 %v711_v40, 0.9999999  ;;  %v778_v50 = vrot.slane %v777_v37, 2 }
 0x2eb   :  { %v1083_v46 = vpop.eup %1082  ;;  %v700_v47 = vadd.f32 0.5, %v684_v41  ;;  %1092 = vtanh.f32 %v659_v42  ;;  %v701_v59 = vadd.f32 0.5, %v685_v48 }
 0x2ec   :  { %v1085_v49 = vpop.eup %1084  ;;  %v782_v51 = vadd.f32 %v719_v15, %v718_v31  ;;  %v728_v52 = vmul.f32 %v719_v15, %v699_v44  ;;  %v736_v16 = vrot.slane %v735_v43, 2  ;;  %v686_v54 = vmul.f32 0.5, %v1083_v46 }
 0x2ed   :  { %v712_v53 = vmax.f32 %v700_v47, 1e-07  ;;  %v687_v61 = vmul.f32 0.5, %v1085_v49  ;;  %v779_v62 = vadd.f32 %v778_v50, %v777_v37 }
 0x2ee   :  { %v783_v55 = vrot.slane %v782_v51, 4  ;;  %v740_v56 = vadd.f32 %v728_v52, %v727_v39  ;;  %v702_v60 = vadd.f32 0.5, %v686_v54  ;;  %v737_v2 = vadd.f32 %v736_v16, %v735_v43 }
 0x2ef   :  { %v1087_v57 = vpop.eup %1086  ;;  %v720_v58 = vmin.f32 %v712_v53, 0.9999999  ;;  %v703_v10 = vadd.f32 0.5, %v687_v61  ;;  %v780_v13 = vrot.slane %v779_v62, 1 }
 0x2f0   :  { %v784_v63 = vadd.f32 %v783_v55, %v782_v51  ;;  %v741_v0 = vrot.slane %v740_v56, 4  ;;  %v713_v4 = vmax.f32 %v702_v60, 1e-07  ;;  %v688_v5 = vmul.f32 0.5, %v1087_v57 }
 0x2f1   :  { %v1089_v1 = vpop.eup %1088  ;;  %v729_v3 = vmul.f32 %v720_v58, %v701_v59  ;;  %v738_v45 = vrot.slane %v737_v2, 1  ;;  %v781_v31 = vadd.f32 %v780_v13, %v779_v62 }
 0x2f2   :  { %v785_v6 = vrot.slane %v784_v63, 2  ;;  %v742_v7 = vadd.f32 %v741_v0, %v740_v56  ;;  %v721_v9 = vmin.f32 %v713_v4, 0.9999999  ;;  %v704_v11 = vadd.f32 0.5, %v688_v5 }
 0x2f3   :  { %v1091_v8 = vpop.eup %1090  ;;  %v689_v12 = vmul.f32 0.5, %v1089_v1  ;;  %v739_v35 = vadd.f32 %v738_v45, %v737_v2  ;;  %v774_v2 = vld [vmem:[#allocation3] sm:$0xf] }
 0x2f4   :  { %v786_v14 = vadd.f32 %v785_v6, %v784_v63  ;;  %v743_v17 = vrot.slane %v742_v7, 2  ;;  %v690_v18 = vmul.f32 0.5, %v1091_v8  ;;  %v789_v20 = vadd.f32 %v721_v9, %v720_v58  ;;  %v724_v6 = vld [vmem:[#allocation2] sm:$0xf] }
 0x2f5   :  { %v1093_v19 = vpop.eup %1092  ;;  %v730_v21 = vmul.f32 %v721_v9, %v703_v10  ;;  %v714_v22 = vmax.f32 %v704_v11, 1e-07  ;;  %v705_v30 = vadd.f32 0.5, %v689_v12 }
 0x2f6   :  { %v787_v24 = vrot.slane %v786_v14, 1  ;;  %v744_v25 = vadd.f32 %v743_v17, %v742_v7  ;;  %v706_v23 = vadd.f32 0.5, %v690_v18  ;;  %v691_v26 = vmul.f32 0.5, %v1093_v19 }
 0x2f7   :  { %v790_v28 = vrot.slane %v789_v20, 4  ;;  %v747_v29 = vadd.f32 %v730_v21, %v729_v3  ;;  %v722_v27 = vmin.f32 %v714_v22, 0.9999999 }
 0x2f8   :  { %v788_v32 = vadd.f32 %v787_v24, %v786_v14  ;;  %v745_v33 = vrot.slane %v744_v25, 1  ;;  %v715_v34 = vmax.f32 %v706_v23, 1e-07  ;;  %v707_v42 = vadd.f32 0.5, %v691_v26 }
 0x2f9   :  { %v791_v36 = vadd.f32 %v790_v28, %v789_v20  ;;  %v748_v37 = vrot.slane %v747_v29, 4  ;;  %v731_v38 = vmul.f32 %v722_v27, %v705_v30 }
 0x2fa   :  { %v807_v39 = vsel %vm765_vm1, %v788_v32, %v781_v31  ;;  %v746_v40 = vadd.f32 %v745_v33, %v744_v25  ;;  %v723_v41 = vmin.f32 %v715_v34, 0.9999999 }
 0x2fb   :  { %v792_v43 = vrot.slane %v791_v36, 2  ;;  %v749_v15 = vadd.f32 %v748_v37, %v747_v29 }
 0x2fc   :  { %v766_v44 = vsel %vm765_vm1, %v746_v40, %v739_v35  ;;  %v796_v46 = vadd.f32 %v723_v41, %v722_v27  ;;  %v732_v47 = vmul.f32 %v723_v41, %v707_v42 }
 0x2fd   :  { %v793_v48 = vadd.f32 %v792_v43, %v791_v36  ;;  %v750_v49 = vrot.slane %v749_v15, 2 }
 0x2fe   :  { %v797_v50 = vrot.slane %v796_v46, 4  ;;  %v754_v51 = vadd.f32 %v732_v47, %v731_v38 }
 0x2ff   :  { %v794_v52 = vrot.slane %v793_v48, 1  ;;  %v751_v16 = vadd.f32 %v750_v49, %v749_v15 }
 0x300   :  { %v798_v53 = vadd.f32 %v797_v50, %v796_v46  ;;  %v755_v54 = vrot.slane %v754_v51, 4 }
 0x301   :  { %v795_v55 = vadd.f32 %v794_v52, %v793_v48  ;;  %v752_v56 = vrot.slane %v751_v16, 1 }
 0x302   :  { %v799_v57 = vrot.slane %v798_v53, 2  ;;  %v756_v58 = vadd.f32 %v755_v54, %v754_v51 }
 0x303   :  { %v808_v59 = vsel %vm767_vm2, %v795_v55, %v807_v39  ;;  %v753_v60 = vadd.f32 %v752_v56, %v751_v16 }
 0x304   :  { %v800_v61 = vadd.f32 %v799_v57, %v798_v53  ;;  %v757_v62 = vrot.slane %v756_v58, 2 }
 0x305   :  { %v768_v63 = vsel %vm767_vm2, %v753_v60, %v766_v44 }
 0x306   :  { %v801_v0 = vrot.slane %v800_v61, 1  ;;  %v758_v1 = vadd.f32 %v757_v62, %v756_v58 }
 0x308   :  { %v802_v3 = vadd.f32 %v801_v0, %v800_v61  ;;  %v759_v4 = vrot.slane %v758_v1, 1 }
 0x30a   :  { %v809_v5 = vsel %vm769_vm3, %v802_v3, %v808_v59  ;;  %v760_v7 = vadd.f32 %v759_v4, %v758_v1 }
 0x30b   :  { %v811_v8 = vadd.f32 %v809_v5, %v774_v2 }
 0x30c   :  { %v770_v9 = vsel %vm769_vm3, %v760_v7, %v768_v63 }
 0x30d   :  { %812 = vst [vmem:[#allocation3] sm:$0xf] %v811_v8  ;;  %v772_v10 = vadd.f32 %v770_v9, %v724_v6 }
 0x30f   :  { %773 = vst [vmem:[#allocation2] sm:$0xf] %v772_v10 }
 0x314   :  { %v817_v11 = vld [vmem:[#allocation3] sm:$0xf] }
 0x315   :  { %1094 = vrcp.f32 %v817_v11 }
 0x316   :  { %v816_v13 = vld [vmem:[#allocation2] sm:$0xf] }
 0x31f   :  { %v1095_v12 = vpop.eup %1094 }
 0x320   :  { %v819_v14 = vmul.f32 %v1095_v12, %v816_v13 }
 0x322   :  { %v820_v17 = vmax.f32 %v819_v14, 0.0 }
 0x324   :  { %v821_v18 = vmin.f32 %v820_v17, 1.0 }
 0x326   :  { %822 = vst [vmem:[#allocation10] sm:$0xf] %v821_v18 }
 0x327   :  { %1173 = shalt.err (!%p1170_p0)
}
 0x328   :  { %s1174_s14 = scalar_lea.hbm %s1386_s5, 64 }
 0x329   :  { %p1175_p1 = scmp.ne.s32.totalorder %s1386_s5, %s1174_s14  ;;  %p1178_p2 = scmp.lt.u32.totalorder %s1174_s14, %s1386_s5 }
 0x32b   :  { %p1180_p3 = pnand %p1178_p2, %p1175_p1 }
 0x32d   :  { %1183 = shalt.err (!%p1180_p3)
}
 0x32e   :  { %832 = dma.vmem_to_hbm [thread:$0]  %s830_s10, 64, %s1386_s5, [#allocation6]  }
 0x32f   :  { %1188 = dma.done.wait [#allocation6], 64  }
 0x330   :  { %1189 = vsyncadd [#allocation6], 4294967232 }
 0x331   :  { %836 = vsyncpa [#allocation5], 1 }
 0x332   :  { %837 = vsyncpa [#allocation8], 1 }
 0x333   :  { %838 = vsyncpa [#allocation6], 1 }

// kernel: tpu_custom_call.1
= control target key start
LH: loop header
LB: loop body
LE: loop exit
PB: predicated region body
PF: predicated region fallthrough
CT: control target
= control target key end

     0   :  { %10 = vsyncpa [#allocation5], 0  ;;  %s1381_s0 = inlined_call_operand.hbm [shape: f32[4,16,32], index: 0, kind: input, shape index: {}]   ;;  %s1382_s1 = inlined_call_operand.hbm [shape: f32[2,128,128], index: 1, kind: input, shape index: {}]   ;;  %s1383_s2 = inlined_call_operand.vmem [shape: f32[2,128], index: 2, kind: input, shape index: {}]   ;;  %s1384_s3 = inlined_call_operand.hbm [shape: f32[128,256], index: 3, kind: input, shape index: {}]   ;;  %s1385_s4 = inlined_call_operand.vmem [shape: f32[1,256], index: 4, kind: input, shape index: {}]   ;;  %s1386_s5 = inlined_call_operand.hbm [shape: f32[1,4,128], index: 5, kind: output, shape index: {}]  }
   0x1   :  { %11 = vsyncpa [#allocation8], 0 }
   0x2   :  { %12 = vsyncpa [#allocation6], 0  ;;  %s1190_s18 = smov [#allocation7]   ;;  %s1191_s20 = smov [#allocation4]  }
   0x3   :  { %s30_s19 = sshll.u32 %s1190_s18, 4  ;;  %s18_s21 = sshll.u32 %s1191_s20, 4  ;;  %s31_s19 = int_to_ptr.vmem [resolvable:$true] %s30_s19  ;;  %s1229_s21 = int_to_ptr.vmem [resolvable:$true] %s18_s21 }
   0x4   :  { %s1096_s24 = scalar_lea.hbm %s1382_s1, 4096 }
   0x5   :  { %p1097_p0 = scmp.ne.s32.totalorder %s1382_s1, %s1096_s24  ;;  %p1100_p1 = scmp.lt.u32.totalorder %s1096_s24, %s1382_s1 }
   0x7   :  { %p1102_p2 = pnand %p1100_p1, %p1097_p0 }
   0x9   :  { %1105 = shalt.err (!%p1102_p2)
}
   0xa   :  { %s1106_s29 = scalar_lea.vmem %s31_s19, 4096  ;;  %p1111_p4 = scmp.lt.s32.totalorder %s31_s19, %s31_s19 }
   0xb   :  { %p1107_p3 = scmp.ne.s32.totalorder %s31_s19, %s1106_s29  ;;  %p1112_p5 = scmp.lt.s32.totalorder %s1106_s29, %s1106_s29 }
   0xd   :  { %p1113_p6 = por %p1112_p5, %p1111_p4 }
   0xf   :  { %p1114_p7 = pnand %p1113_p6, %p1107_p3 }
  0x11   :  { %1117 = shalt.err (!%p1114_p7)
}
  0x12   :  { %s1192_s30 = smov 128   ;;  %s1193_s6 = smov 8  }
  0x13   :  { %36 = dma.hbm_to_vmem [thread:$0]  %s1382_s1, 4096, %s31_s19, [#allocation8], %s1192_s30, %s1192_s30, %s1193_s6  }
  0x14   :  { %s1118_s11 = scalar_lea.hbm %s1381_s0, 1024 }
  0x15   :  { %p1119_p8 = scmp.ne.s32.totalorder %s1381_s0, %s1118_s11  ;;  %p1122_p9 = scmp.lt.u32.totalorder %s1118_s11, %s1381_s0 }
  0x17   :  { %p1124_p10 = pnand %p1122_p9, %p1119_p8 }
  0x19   :  { %1127 = shalt.err (!%p1124_p10)
}
  0x1a   :  { %s1128_s16 = scalar_lea.vmem %s1229_s21, 1024  ;;  %p1133_p12 = scmp.lt.s32.totalorder %s1229_s21, %s1229_s21 }
  0x1b   :  { %p1129_p11 = scmp.ne.s32.totalorder %s1229_s21, %s1128_s16  ;;  %p1134_p13 = scmp.lt.s32.totalorder %s1128_s16, %s1128_s16 }
  0x1d   :  { %p1135_p0 = por %p1134_p13, %p1133_p12 }
  0x1f   :  { %p1136_p1 = pnand %p1135_p0, %p1129_p11 }
  0x21   :  { %1139 = shalt.err (!%p1136_p1)
}
  0x22   :  { %24 = dma.hbm_to_vmem [thread:$0]  %s1381_s0, 1024, %s1229_s21, [#allocation5], %s1192_s30, %s1192_s30, %s1193_s6  }
  0x23   :  { %s1194_s18 = smov [#allocation9]   ;;  %s1140_s23 = scalar_lea.hbm %s1384_s3, 4096 }
  0x24   :  { %s44_s19 = sshll.u32 %s1194_s18, 4  ;;  %p1141_p2 = scmp.ne.s32.totalorder %s1384_s3, %s1140_s23  ;;  %s45_s19 = int_to_ptr.vmem [resolvable:$true] %s44_s19 }
  0x25   :  { %p1144_p3 = scmp.lt.u32.totalorder %s1140_s23, %s1384_s3 }
  0x27   :  { %p1146_p4 = pnand %p1144_p3, %p1141_p2 }
  0x29   :  { %1149 = shalt.err (!%p1146_p4)
}
  0x2a   :  { %s1150_s28 = scalar_lea.vmem %s45_s19, 4096  ;;  %p1155_p6 = scmp.lt.s32.totalorder %s45_s19, %s45_s19 }
  0x2b   :  { %p1151_p5 = scmp.ne.s32.totalorder %s45_s19, %s1150_s28  ;;  %p1156_p7 = scmp.lt.s32.totalorder %s1150_s28, %s1150_s28 }
  0x2d   :  { %p1157_p8 = por %p1156_p7, %p1155_p6 }
  0x2f   :  { %p1158_p9 = pnand %p1157_p8, %p1151_p5 }
  0x31   :  { %1161 = shalt.err (!%p1158_p9)
}
  0x32   :  { %s1195_s0 = smov 256   ;;  %s1196_s21 = smov 16  }
  0x33   :  { %50 = dma.hbm_to_vmem [thread:$0]  %s1384_s3, 4096, %s45_s19, [#allocation8], %s1195_s0, %s1195_s0, %s1196_s21  }
  0x34   :  { %1184 = dma.done.wait [#allocation5], 1024  }
  0x35   :  { %1185 = vsyncadd [#allocation5], 4294966272 }
  0x36   :  { %1186 = dma.done.wait [#allocation8], 8192  }
  0x37   :  { %1187 = vsyncadd [#allocation8], 4294959104  ;;  %vm85_vm0 = vcmask 261120   ;;  %v76_v0 = vld [vmem:[#allocation7] sm:$0xff]  ;;  %v77_v1 = vld [vmem:[#allocation7 + $0x8] sm:$0xff]  ;;  %v1197_v45 = vmov 0.0  }
  0x38   :  { %v78_v2 = vld [vmem:[#allocation7 + $0x10] sm:$0xff]  ;;  %v957_v3 = vpack.c.bf16 %v77_v1, %v76_v0  ;;  %v79_v4 = vld [vmem:[#allocation7 + $0x18] sm:$0xff]  ;;  %v1272_v5 = vld [vmem:[#allocation4] sm:$0xff]  ;;  %454 = vmatprep.mubr.f32.mxu0 %v1197_v45  ;;  %66 = vst [vmem:[#allocation2] sm:$0xf] %v1197_v45  ;;  %vm765_vm1 = vcmask 1041409  }
  0x39   :  { %v961_v6 = vpack.c.bf16 %v79_v4, %v78_v2  ;;  %901 = vmatprep.mubr.msk.f32.mxu1 %vm85_vm0, %v1272_v5  ;;  %v224_v7 = vld [vmem:[#allocation7 + $0x80] sm:$0xff]  ;;  %v225_v8 = vld [vmem:[#allocation7 + $0x88] sm:$0xff]  ;;  %v226_v10 = vld [vmem:[#allocation7 + $0x90] sm:$0xff]  ;;  %67 = vst [vmem:[#allocation3] sm:$0xf] %v1197_v45  ;;  %vm767_vm2 = vcmask 1042434  }
  0x3a   :  { %958 = vmatprep.subr.bf16.mxu1 %v957_v3  ;;  %v965_v9 = vpack.c.bf16 %v225_v8, %v224_v7  ;;  %v227_v11 = vld [vmem:[#allocation7 + $0x98] sm:$0xff]  ;;  %v1276_v12 = vld [vmem:[#allocation4 + $0x8] sm:$0xff]  ;;  %v1278_v13 = vld [vmem:[#allocation4 + $0x10] sm:$0xff]  ;;  %vm769_vm3 = vcmask 1043459  }
  0x3b   :  { %960 = vmatpush3.bf16.msra.mxu1 %v957_v3  ;;  %v969_v14 = vpack.c.bf16 %v227_v11, %v226_v10  ;;  %v228_v15 = vld [vmem:[#allocation7 + $0xa0] sm:$0xff]  ;;  %v229_v16 = vld [vmem:[#allocation7 + $0xa8] sm:$0xff]  ;;  %v1284_v17 = vld [vmem:[#allocation4 + $0x18] sm:$0xff] }
  0x3c   :  { %962 = vmatprep.subr.bf16.mxu1 %v961_v6  ;;  %v1286_v18 = vld [vmem:[#allocation4 + $0x20] sm:$0xff]  ;;  %v973_v19 = vpack.c.bf16 %v229_v16, %v228_v15  ;;  %v230_v20 = vld [vmem:[#allocation7 + $0xb0] sm:$0xff]  ;;  %v231_v21 = vld [vmem:[#allocation7 + $0xb8] sm:$0xff] }
  0x3d   :  { %v1292_v22 = vld [vmem:[#allocation4 + $0x28] sm:$0xff]  ;;  %v1294_v23 = vld [vmem:[#allocation4 + $0x30] sm:$0xff]  ;;  %v977_v24 = vpack.c.bf16 %v231_v21, %v230_v20  ;;  %v232_v25 = vld [vmem:[#allocation7 + $0xc0] sm:$0xff] }
  0x3e   :  { %v233_v26 = vld [vmem:[#allocation7 + $0xc8] sm:$0xff]  ;;  %v1300_v27 = vld [vmem:[#allocation4 + $0x38] sm:$0xff]  ;;  %v234_v29 = vld [vmem:[#allocation7 + $0xd0] sm:$0xff] }
  0x3f   :  { %964 = vmatpush3.bf16.msra.mxu1 %v961_v6  ;;  %v981_v28 = vpack.c.bf16 %v233_v26, %v232_v25  ;;  %v235_v30 = vld [vmem:[#allocation7 + $0xd8] sm:$0xff]  ;;  %v236_v32 = vld [vmem:[#allocation7 + $0xe0] sm:$0xff]  ;;  %v237_v33 = vld [vmem:[#allocation7 + $0xe8] sm:$0xff] }
  0x40   :  { %966 = vmatprep.subr.bf16.mxu1 %v965_v9  ;;  %v985_v31 = vpack.c.bf16 %v235_v30, %v234_v29  ;;  %v989_v34 = vpack.c.bf16 %v237_v33, %v236_v32  ;;  %v238_v35 = vld [vmem:[#allocation7 + $0xf0] sm:$0xff]  ;;  %v239_v36 = vld [vmem:[#allocation7 + $0xf8] sm:$0xff]  ;;  %v359_v38 = vld [vmem:[#allocation9 + $0x8] sm:$0xff] }
  0x41   :  { %v993_v37 = vpack.c.bf16 %v239_v36, %v238_v35  ;;  %v361_v39 = vld [vmem:[#allocation9 + $0x18] sm:$0xff]  ;;  %v358_v40 = vld [vmem:[#allocation9] sm:$0xff]  ;;  %v360_v42 = vld [vmem:[#allocation9 + $0x10] sm:$0xff] }
  0x42   :  { %902 = vmatmul.mubr.msk.f32.vlgmr.msra.gmra.mrb[0].mxu1 %vm85_vm0, %v1276_v12  ;;  %v997_v41 = vpack.c.bf16 %v361_v39, %v359_v38  ;;  %v363_v43 = vld [vmem:[#allocation9 + $0x28] sm:$0xff]  ;;  %v365_v44 = vld [vmem:[#allocation9 + $0x38] sm:$0xff]  ;;  %v999_v46 = vpack.c.bf16 %v360_v42, %v358_v40  ;;  %v362_v48 = vld [vmem:[#allocation9 + $0x20] sm:$0xff] }
  0x43   :  { %904 = vmatprep.mubr.msk.f32.mxu1 %vm85_vm0, %v1278_v13  ;;  %968 = vmatpush3.bf16.msra.mxu1 %v965_v9  ;;  %v1001_v47 = vpack.c.bf16 %v365_v44, %v363_v43  ;;  %v364_v49 = vld [vmem:[#allocation9 + $0x30] sm:$0xff]  ;;  %v367_v51 = vld [vmem:[#allocation9 + $0x48] sm:$0xff]  ;;  %v369_v52 = vld [vmem:[#allocation9 + $0x58] sm:$0xff] }
  0x44   :  { %970 = vmatprep.subr.bf16.mxu1 %v969_v14  ;;  %998 = vmatprep.subr.bf16.mxu0 %v997_v41  ;;  %v1003_v50 = vpack.c.bf16 %v364_v49, %v362_v48  ;;  %v1013_v53 = vpack.c.bf16 %v369_v52, %v367_v51  ;;  %v366_v54 = vld [vmem:[#allocation9 + $0x40] sm:$0xff]  ;;  %v368_v55 = vld [vmem:[#allocation9 + $0x50] sm:$0xff]  ;;  %v371_v56 = vld [vmem:[#allocation9 + $0x68] sm:$0xff] }
  0x45   :  { %1000 = vmatpush1.bf16.msra.mxu0 %v999_v46  ;;  %v373_v57 = vld [vmem:[#allocation9 + $0x78] sm:$0xff]  ;;  %v1015_v58 = vpack.c.bf16 %v368_v55, %v366_v54  ;;  %v370_v60 = vld [vmem:[#allocation9 + $0x60] sm:$0xff]  ;;  %v372_v61 = vld [vmem:[#allocation9 + $0x70] sm:$0xff] }
  0x46   :  { %905 = vmatmul.mubr.msk.f32.gmra.mrb[2].mxu1 %vm85_vm0, %v1284_v17  ;;  %1002 = vmatprep.subr.bf16.mxu0 %v1001_v47  ;;  %v1017_v59 = vpack.c.bf16 %v373_v57, %v371_v56  ;;  %v375_v62 = vld [vmem:[#allocation9 + $0x88] sm:$0xff]  ;;  %v377_v63 = vld [vmem:[#allocation9 + $0x98] sm:$0xff]  ;;  %v1019_v0 = vpack.c.bf16 %v372_v61, %v370_v60  ;;  %v374_v2 = vld [vmem:[#allocation9 + $0x80] sm:$0xff] }
  0x47   :  { %907 = vmatprep.mubr.msk.f32.mxu1 %vm85_vm0, %v1286_v18  ;;  %972 = vmatpush3.bf16.msra.mxu1 %v969_v14  ;;  %v1021_v1 = vpack.c.bf16 %v377_v63, %v375_v62  ;;  %v376_v3 = vld [vmem:[#allocation9 + $0x90] sm:$0xff]  ;;  %v379_v4 = vld [vmem:[#allocation9 + $0xa8] sm:$0xff]  ;;  %v378_v8 = vld [vmem:[#allocation9 + $0xa0] sm:$0xff] }
  0x48   :  { %974 = vmatprep.subr.bf16.mxu1 %v973_v19  ;;  %v1023_v6 = vpack.c.bf16 %v376_v3, %v374_v2  ;;  %v380_v9 = vld [vmem:[#allocation9 + $0xb0] sm:$0xff]  ;;  %v383_v10 = vld [vmem:[#allocation9 + $0xc8] sm:$0xff]  ;;  %v385_v11 = vld [vmem:[#allocation9 + $0xd8] sm:$0xff] }
  0x49   :  { %1004 = vmatpush1.bf16.msra.mxu0 %v1003_v50  ;;  %v382_v14 = vld [vmem:[#allocation9 + $0xc0] sm:$0xff]  ;;  %v384_v15 = vld [vmem:[#allocation9 + $0xd0] sm:$0xff]  ;;  %v387_v42 = vld [vmem:[#allocation9 + $0xe8] sm:$0xff] }
  0x4a   :  { %908 = vmatmul.mubr.msk.f32.gmra.mrb[4].mxu1 %vm85_vm0, %v1292_v22  ;;  %1006 = vmatprep.subr.bf16.mxu0 %v997_v41  ;;  %v1031_v16 = vpack.c.bf16 %v384_v15, %v382_v14  ;;  %v389_v43 = vld [vmem:[#allocation9 + $0xf8] sm:$0xff] }
  0x4b   :  { %910 = vmatprep.mubr.msk.f32.mxu1 %vm85_vm0, %v1294_v23  ;;  %976 = vmatpush3.bf16.msra.mxu1 %v973_v19  ;;  %v1033_v44 = vpack.c.bf16 %v389_v43, %v387_v42  ;;  %v848_v49 = vld [vmem:[%s1383_s2 + $0x1] ss:$0 sm:$0xff] }
  0x4c   :  { %978 = vmatprep.subr.bf16.mxu1 %v977_v24  ;;  %849 = vmatmul.mubr.msk.f32.vlgmr.msra.gmra.mrb[0].mxu0 %vm85_vm0, %v1272_v5  ;;  %v381_v5 = vld [vmem:[#allocation9 + $0xb8] sm:$0xff] }
  0x4d   :  { %1008 = vmatpush1.bf16.msra.mxu0 %v999_v46  ;;  %460 = vmatprep.mubr.f32.mxu0 %v1197_v45  ;;  %v1025_v7 = vpack.c.bf16 %v381_v5, %v379_v4  ;;  %v386_v46 = vld [vmem:[#allocation9 + $0xe0] sm:$0xff] }
  0x4e   :  { %911 = vmatmul.mubr.msk.f32.gmra.mrb[6].mxu1 %vm85_vm0, %v1300_v27  ;;  %1010 = vmatprep.subr.bf16.mxu0 %v1001_v47  ;;  %v388_v47 = vld [vmem:[#allocation9 + $0xf0] sm:$0xff] }
  0x4f   :  { %980 = vmatpush3.bf16.msra.mxu1 %v977_v24  ;;  %v1035_v48 = vpack.c.bf16 %v388_v47, %v386_v46 }
  0x50   :  { %982 = vmatprep.subr.bf16.mxu1 %v981_v28  ;;  %850 = vmatmul.mubr.msk.f32.gmra.mrb[2].mxu0 %vm85_vm0, %v1276_v12  ;;  %v1027_v12 = vpack.c.bf16 %v380_v9, %v378_v8 }
  0x51   :  { %1012 = vmatpush1.bf16.msra.mxu0 %v1003_v50  ;;  %466 = vmatprep.mubr.f32.mxu0 %v1197_v45 }
  0x52   :  { %1014 = vmatprep.subr.bf16.mxu0 %v1013_v53 }
  0x53   :  { %984 = vmatpush3.bf16.msra.mxu1 %v981_v28 }
  0x54   :  { %986 = vmatprep.subr.bf16.mxu1 %v985_v31  ;;  %851 = vmatmul.mubr.msk.f32.gmra.mrb[4].mxu0 %vm85_vm0, %v1278_v13  ;;  %v1029_v13 = vpack.c.bf16 %v385_v11, %v383_v10  ;;  %v618_v10 = vlaneseq }
  0x55   :  { %1016 = vmatpush1.bf16.msra.mxu0 %v1015_v58  ;;  %472 = vmatprep.mubr.f32.mxu0 %v1197_v45 }
  0x56   :  { %1018 = vmatprep.subr.bf16.mxu0 %v1017_v59  ;;  %v619_v11 = vshrl.u32 %v618_v10, 7 }
  0x57   :  { %988 = vmatpush3.bf16.msra.mxu1 %v985_v31 }
  0x58   :  { %990 = vmatprep.subr.bf16.mxu1 %v989_v34  ;;  %852 = vmatmul.mubr.msk.f32.gmra.mrb[6].mxu0 %vm85_vm0, %v1284_v17  ;;  %v839_v17 = vld [vmem:[%s1383_s2] ss:$0 sm:$0xff]  ;;  %v624_v14 = vsub.s32 1, %v619_v11 }
  0x59   :  { %1020 = vmatpush1.bf16.msra.mxu0 %v1019_v0  ;;  %478 = vmatprep.mubr.f32.mxu0 %v1197_v45 }
  0x5a   :  { %1022 = vmatprep.subr.bf16.mxu0 %v1021_v1 }
  0x5b   :  { %992 = vmatpush3.bf16.msra.mxu1 %v989_v34 }
  0x5c   :  { %994 = vmatprep.subr.bf16.mxu1 %v993_v37  ;;  %853 = vmatmul.mubr.msk.f32.gmra.mrb[8].mxu0 %vm85_vm0, %v1286_v18 }
  0x5d   :  { %1024 = vmatpush1.bf16.msra.mxu0 %v1023_v6  ;;  %484 = vmatprep.mubr.f32.mxu0 %v1197_v45 }
  0x5e   :  { %1026 = vmatprep.subr.bf16.mxu0 %v1025_v7 }
  0x5f   :  { %996 = vmatpush3.bf16.msra.mxu1 %v993_v37 }
  0x60   :  { %854 = vmatmul.mubr.msk.f32.gmra.mrb[10].mxu0 %vm85_vm0, %v1292_v22 }
  0x61   :  { %1028 = vmatpush1.bf16.msra.mxu0 %v1027_v12  ;;  %490 = vmatprep.mubr.f32.mxu0 %v1197_v45  ;;  %v620_v12 = vsub.s32 0, %v619_v11 }
  0x62   :  { %1030 = vmatprep.subr.bf16.mxu0 %v1029_v13  ;;  %v616_v13 = vld [vmem:[%s1385_s4] sm:$0x3]  ;;  %s1198_s4 = smov [#allocation10]  }
  0x63   :  { %v1347_v15 = vrot.slane %v616_v13, %v620_v12  ;;  %s829_s10 = sshll.u32 %s1198_s4, 4  ;;  %s830_s10 = int_to_ptr.vmem [resolvable:$true] %s829_s10 }
  0x64   :  { %855 = vmatmul.mubr.msk.f32.gmra.mrb[12].mxu0 %vm85_vm0, %v1294_v23  ;;  %s1162_s11 = scalar_lea.vmem %s830_s10, 64  ;;  %p1167_p11 = scmp.lt.s32.totalorder %s830_s10, %s830_s10 }
  0x65   :  { %1032 = vmatpush1.bf16.msra.mxu0 %v1031_v16  ;;  %496 = vmatprep.mubr.f32.mxu0 %v1197_v45  ;;  %v1349_v16 = vrot.slane %v616_v13, %v624_v14  ;;  %p1163_p10 = scmp.ne.s32.totalorder %s830_s10, %s1162_s11  ;;  %p1168_p12 = scmp.lt.s32.totalorder %s1162_s11, %s1162_s11 }
  0x66   :  { %1034 = vmatprep.subr.bf16.mxu0 %v1033_v44 }
  0x67   :  { %p1169_p13 = por %p1168_p12, %p1167_p11 }
  0x68   :  { %856 = vmatmul.mubr.msk.f32.gmra.mrb[14].mxu0 %vm85_vm0, %v1300_v27 }
  0x69   :  { %567 = vmatprep.mubr.f32.mxu0 %v1197_v45  ;;  %1036 = vmatpush1.bf16.msra.mxu0 %v1035_v48  ;;  %p1170_p0 = pnand %p1169_p13, %p1163_p10 }
 0x115   :  { %v903_v18 = vpop.f32.mrb[0].mxu1 }
 0x116   :  { %v182_v19 = vadd.f32 %v903_v18, %v839_v17  ;;  %v176_v20 = vpop.f32.mrb[1].mxu1 }
 0x117   :  { %v177_v21 = vadd.f32 %v839_v17, %v176_v20 }
 0x118   :  { %v216_v25 = vmax.f32 %v182_v19, 0.0 }
 0x119   :  { %v215_v22 = vmax.f32 %v177_v21, 0.0  ;;  %v906_v24 = vpop.f32.mrb[2].mxu1 }
 0x11a   :  { %v192_v23 = vadd.f32 %v906_v24, %v839_v17  ;;  %v186_v26 = vpop.f32.mrb[3].mxu1 }
 0x11b   :  { %v187_v28 = vadd.f32 %v839_v17, %v186_v26  ;;  %945 = vmatprep.mubr.f32.mxu1 %v215_v22 }
 0x11c   :  { %v218_v29 = vmax.f32 %v192_v23, 0.0  ;;  %946 = vmatmul.mubr.f32.vlgmr.msra.gmra.mrb[8].mxu1 %v216_v25 }
 0x11d   :  { %v217_v27 = vmax.f32 %v187_v28, 0.0  ;;  %v909_v30 = vpop.f32.mrb[4].mxu1 }
 0x11e   :  { %v202_v31 = vadd.f32 %v909_v30, %v839_v17  ;;  %v196_v32 = vpop.f32.mrb[5].mxu1 }
 0x11f   :  { %948 = vmatprep.mubr.f32.mxu1 %v217_v27  ;;  %v197_v33 = vadd.f32 %v839_v17, %v196_v32 }
 0x120   :  { %949 = vmatmul.mubr.f32.gmra.mrb[10].mxu1 %v218_v29  ;;  %v220_v34 = vmax.f32 %v202_v31, 0.0 }
 0x121   :  { %v219_v35 = vmax.f32 %v197_v33, 0.0  ;;  %v912_v36 = vpop.f32.mrb[6].mxu1 }
 0x122   :  { %v212_v37 = vadd.f32 %v912_v36, %v839_v17  ;;  %v206_v38 = vpop.f32.mrb[7].mxu1 }
 0x123   :  { %951 = vmatprep.mubr.f32.mxu1 %v219_v35  ;;  %v207_v39 = vadd.f32 %v839_v17, %v206_v38 }
 0x124   :  { %952 = vmatmul.mubr.f32.gmra.mrb[12].mxu1 %v220_v34  ;;  %v222_v40 = vmax.f32 %v212_v37, 0.0 }
 0x125   :  { %v221_v41 = vmax.f32 %v207_v39, 0.0 }
 0x127   :  { %954 = vmatprep.mubr.f32.mxu1 %v221_v41 }
 0x128   :  { %955 = vmatmul.mubr.f32.gmra.mrb[14].mxu1 %v222_v40 }
 0x1ef   :  { %v947_v50 = vpop.f32.mrb[8].mxu1 }
 0x1f0   :  { %v311_v51 = vpop.f32.mrb[9].mxu1  ;;  %v317_v53 = vadd.f32 %v947_v50, %v848_v49 }
 0x1f1   :  { %v312_v52 = vadd.f32 %v848_v49, %v311_v51 }
 0x1f2   :  { %v351_v57 = vmax.f32 %v317_v53, 0.0 }
 0x1f3   :  { %v350_v54 = vmax.f32 %v312_v52, 0.0  ;;  %v950_v55 = vpop.f32.mrb[10].mxu1 }
 0x1f4   :  { %v321_v56 = vpop.f32.mrb[11].mxu1  ;;  %v327_v61 = vadd.f32 %v950_v55, %v848_v49 }
 0x1f5   :  { %568 = vmatmul.mubr.f32.vlgmr.msra.gmra.mrb[0].mxu0 %v350_v54  ;;  %v322_v58 = vadd.f32 %v848_v49, %v321_v56 }
 0x1f6   :  { %573 = vmatprep.mubr.f32.mxu0 %v1197_v45  ;;  %v353_v1 = vmax.f32 %v327_v61, 0.0 }
 0x1f7   :  { %v953_v59 = vpop.f32.mrb[12].mxu1  ;;  %v352_v62 = vmax.f32 %v322_v58, 0.0 }
 0x1f8   :  { %v331_v60 = vpop.f32.mrb[13].mxu1  ;;  %v337_v3 = vadd.f32 %v953_v59, %v848_v49 }
 0x1f9   :  { %574 = vmatmul.mubr.f32.gmra.mrb[2].mxu0 %v351_v57  ;;  %v332_v2 = vadd.f32 %v848_v49, %v331_v60 }
 0x1fa   :  { %579 = vmatprep.mubr.f32.mxu0 %v1197_v45  ;;  %v355_v5 = vmax.f32 %v337_v3, 0.0 }
 0x1fb   :  { %v956_v63 = vpop.f32.mrb[14].mxu1  ;;  %v354_v4 = vmax.f32 %v332_v2, 0.0 }
 0x1fc   :  { %v341_v0 = vpop.f32.mrb[15].mxu1  ;;  %v347_v7 = vadd.f32 %v956_v63, %v848_v49 }
 0x1fd   :  { %580 = vmatmul.mubr.f32.gmra.mrb[4].mxu0 %v352_v62  ;;  %v342_v6 = vadd.f32 %v848_v49, %v341_v0 }
 0x1fe   :  { %585 = vmatprep.mubr.f32.mxu0 %v1197_v45  ;;  %v357_v9 = vmax.f32 %v347_v7, 0.0 }
 0x1ff   :  { %v356_v8 = vmax.f32 %v342_v6, 0.0 }
 0x201   :  { %586 = vmatmul.mubr.f32.gmra.mrb[6].mxu0 %v353_v1 }
 0x202   :  { %591 = vmatprep.mubr.f32.mxu0 %v1197_v45 }
 0x205   :  { %592 = vmatmul.mubr.f32.gmra.mrb[8].mxu0 %v354_v4 }
 0x206   :  { %597 = vmatprep.mubr.f32.mxu0 %v1197_v45 }
 0x209   :  { %598 = vmatmul.mubr.f32.gmra.mrb[10].mxu0 %v355_v5 }
 0x20a   :  { %603 = vmatprep.mubr.f32.mxu0 %v1197_v45 }
 0x20d   :  { %604 = vmatmul.mubr.f32.gmra.mrb[12].mxu0 %v356_v8 }
 0x20e   :  { %609 = vmatprep.mubr.f32.mxu0 %v1197_v45 }
 0x211   :  { %610 = vmatmul.mubr.f32.gmra.mrb[14].mxu0 %v357_v9 }
 0x2c8   :  { %v569_v17 = vpop.f32.mrb[0].mxu0 }
 0x2c9   :  { %v628_v18 = vadd.f32 %v1347_v15, %v569_v17  ;;  %v571_v19 = vpop.f32.mrb[1].mxu0 }
 0x2ca   :  { %v629_v45 = vadd.f32 %v1349_v16, %v571_v19 }
 0x2cb   :  { %v644_v20 = vmul.f32 0.5, %v628_v18 }
 0x2cc   :  { %v645_v21 = vmul.f32 0.5, %v629_v45  ;;  %v575_v22 = vpop.f32.mrb[2].mxu0 }
 0x2cd   :  { %1062 = vtanh.f32 %v644_v20  ;;  %v630_v24 = vadd.f32 %v1347_v15, %v575_v22  ;;  %v577_v25 = vpop.f32.mrb[3].mxu0 }
 0x2ce   :  { %1064 = vtanh.f32 %v645_v21  ;;  %v631_v23 = vadd.f32 %v1349_v16, %v577_v25 }
 0x2cf   :  { %v646_v26 = vmul.f32 0.5, %v630_v24 }
 0x2d0   :  { %v647_v28 = vmul.f32 0.5, %v631_v23  ;;  %v581_v29 = vpop.f32.mrb[4].mxu0 }
 0x2d1   :  { %1066 = vtanh.f32 %v646_v26  ;;  %v632_v27 = vadd.f32 %v1347_v15, %v581_v29  ;;  %v583_v30 = vpop.f32.mrb[5].mxu0 }
 0x2d2   :  { %1068 = vtanh.f32 %v647_v28  ;;  %v633_v31 = vadd.f32 %v1349_v16, %v583_v30 }
 0x2d3   :  { %v648_v32 = vmul.f32 0.5, %v632_v27 }
 0x2d4   :  { %v649_v33 = vmul.f32 0.5, %v633_v31  ;;  %v587_v34 = vpop.f32.mrb[6].mxu0 }
 0x2d5   :  { %1070 = vtanh.f32 %v648_v32  ;;  %v634_v35 = vadd.f32 %v1347_v15, %v587_v34  ;;  %v589_v36 = vpop.f32.mrb[7].mxu0 }
 0x2d6   :  { %1072 = vtanh.f32 %v649_v33  ;;  %v635_v37 = vadd.f32 %v1349_v16, %v589_v36 }
 0x2d7   :  { %v1063_v38 = vpop.eup %1062  ;;  %v650_v39 = vmul.f32 0.5, %v634_v35 }
 0x2d8   :  { %v1065_v40 = vpop.eup %1064  ;;  %v676_v41 = vmul.f32 0.5, %v1063_v38  ;;  %v651_v42 = vmul.f32 0.5, %v635_v37  ;;  %v593_v43 = vpop.f32.mrb[8].mxu0 }
 0x2d9   :  { %v677_v44 = vmul.f32 0.5, %v1065_v40  ;;  %1074 = vtanh.f32 %v650_v39  ;;  %v636_v46 = vadd.f32 %v1347_v15, %v593_v43  ;;  %v595_v47 = vpop.f32.mrb[9].mxu0 }
 0x2da   :  { %v692_v48 = vadd.f32 0.5, %v676_v41  ;;  %1076 = vtanh.f32 %v651_v42  ;;  %v637_v49 = vadd.f32 %v1349_v16, %v595_v47 }
 0x2db   :  { %v1067_v50 = vpop.eup %1066  ;;  %v652_v51 = vmul.f32 0.5, %v636_v46  ;;  %v693_v57 = vadd.f32 0.5, %v677_v44 }
 0x2dc   :  { %v1069_v52 = vpop.eup %1068  ;;  %v708_v53 = vmax.f32 %v692_v48, 1e-07  ;;  %v678_v54 = vmul.f32 0.5, %v1067_v50  ;;  %v653_v55 = vmul.f32 0.5, %v637_v49  ;;  %v599_v56 = vpop.f32.mrb[10].mxu0 }
 0x2dd   :  { %v679_v58 = vmul.f32 0.5, %v1069_v52  ;;  %1078 = vtanh.f32 %v652_v51  ;;  %v638_v59 = vadd.f32 %v1347_v15, %v599_v56  ;;  %v601_v60 = vpop.f32.mrb[11].mxu0 }
 0x2de   :  { %v716_v61 = vmin.f32 %v708_v53, 0.9999999  ;;  %v694_v62 = vadd.f32 0.5, %v678_v54  ;;  %1080 = vtanh.f32 %v653_v55  ;;  %v639_v63 = vadd.f32 %v1349_v16, %v601_v60 }
 0x2df   :  { %v1071_v0 = vpop.eup %1070  ;;  %v654_v1 = vmul.f32 0.5, %v638_v59  ;;  %v695_v8 = vadd.f32 0.5, %v679_v58 }
 0x2e0   :  { %v1073_v2 = vpop.eup %1072  ;;  %v725_v3 = vmul.f32 %v716_v61, %v693_v57  ;;  %v709_v4 = vmax.f32 %v694_v62, 1e-07  ;;  %v680_v5 = vmul.f32 0.5, %v1071_v0  ;;  %v655_v6 = vmul.f32 0.5, %v639_v63  ;;  %v605_v7 = vpop.f32.mrb[12].mxu0 }
 0x2e1   :  { %v681_v9 = vmul.f32 0.5, %v1073_v2  ;;  %1082 = vtanh.f32 %v654_v1  ;;  %v640_v10 = vadd.f32 %v1347_v15, %v605_v7  ;;  %v607_v11 = vpop.f32.mrb[13].mxu0 }
 0x2e2   :  { %v717_v12 = vmin.f32 %v709_v4, 0.9999999  ;;  %v696_v13 = vadd.f32 0.5, %v680_v5  ;;  %1084 = vtanh.f32 %v655_v6  ;;  %v641_v14 = vadd.f32 %v1349_v16, %v607_v11 }
 0x2e3   :  { %v1075_v17 = vpop.eup %1074  ;;  %v697_v18 = vadd.f32 0.5, %v681_v9  ;;  %v656_v19 = vmul.f32 0.5, %v640_v10 }
 0x2e4   :  { %v1077_v45 = vpop.eup %1076  ;;  %v775_v20 = vadd.f32 %v717_v12, %v716_v61  ;;  %v726_v21 = vmul.f32 %v717_v12, %v695_v8  ;;  %v710_v22 = vmax.f32 %v696_v13, 1e-07  ;;  %v682_v24 = vmul.f32 0.5, %v1075_v17  ;;  %v611_v25 = vpop.f32.mrb[14].mxu0 }
 0x2e5   :  { %v683_v23 = vmul.f32 0.5, %v1077_v45  ;;  %1086 = vtanh.f32 %v656_v19  ;;  %v657_v26 = vmul.f32 0.5, %v641_v14  ;;  %v642_v28 = vadd.f32 %v1347_v15, %v611_v25  ;;  %v613_v29 = vpop.f32.mrb[15].mxu0 }
 0x2e6   :  { %v776_v27 = vrot.slane %v775_v20, 4  ;;  %v733_v30 = vadd.f32 %v726_v21, %v725_v3  ;;  %v718_v31 = vmin.f32 %v710_v22, 0.9999999  ;;  %v698_v32 = vadd.f32 0.5, %v682_v24 }
 0x2e7   :  { %v1079_v33 = vpop.eup %1078  ;;  %1088 = vtanh.f32 %v657_v26  ;;  %v658_v34 = vmul.f32 0.5, %v642_v28  ;;  %v643_v35 = vadd.f32 %v1349_v16, %v613_v29  ;;  %v699_v44 = vadd.f32 0.5, %v683_v23 }
 0x2e8   :  { %v1081_v36 = vpop.eup %1080  ;;  %v777_v37 = vadd.f32 %v776_v27, %v775_v20  ;;  %v734_v38 = vrot.slane %v733_v30, 4  ;;  %v727_v39 = vmul.f32 %v718_v31, %v697_v18  ;;  %v711_v40 = vmax.f32 %v698_v32, 1e-07 }
 0x2e9   :  { %v684_v41 = vmul.f32 0.5, %v1079_v33  ;;  %1090 = vtanh.f32 %v658_v34  ;;  %v659_v42 = vmul.f32 0.5, %v643_v35  ;;  %v685_v48 = vmul.f32 0.5, %v1081_v36 }
 0x2ea   :  { %v735_v43 = vadd.f32 %v734_v38, %v733_v30  ;;  %v719_v15 = vmin.f32 %v711_v40, 0.9999999  ;;  %v778_v50 = vrot.slane %v777_v37, 2 }
 0x2eb   :  { %v1083_v46 = vpop.eup %1082  ;;  %v700_v47 = vadd.f32 0.5, %v684_v41  ;;  %1092 = vtanh.f32 %v659_v42  ;;  %v701_v59 = vadd.f32 0.5, %v685_v48 }
 0x2ec   :  { %v1085_v49 = vpop.eup %1084  ;;  %v782_v51 = vadd.f32 %v719_v15, %v718_v31  ;;  %v728_v52 = vmul.f32 %v719_v15, %v699_v44  ;;  %v736_v16 = vrot.slane %v735_v43, 2  ;;  %v686_v54 = vmul.f32 0.5, %v1083_v46 }
 0x2ed   :  { %v712_v53 = vmax.f32 %v700_v47, 1e-07  ;;  %v687_v61 = vmul.f32 0.5, %v1085_v49  ;;  %v779_v62 = vadd.f32 %v778_v50, %v777_v37 }
 0x2ee   :  { %v783_v55 = vrot.slane %v782_v51, 4  ;;  %v740_v56 = vadd.f32 %v728_v52, %v727_v39  ;;  %v702_v60 = vadd.f32 0.5, %v686_v54  ;;  %v737_v2 = vadd.f32 %v736_v16, %v735_v43 }
 0x2ef   :  { %v1087_v57 = vpop.eup %1086  ;;  %v720_v58 = vmin.f32 %v712_v53, 0.9999999  ;;  %v703_v10 = vadd.f32 0.5, %v687_v61  ;;  %v780_v13 = vrot.slane %v779_v62, 1 }
 0x2f0   :  { %v784_v63 = vadd.f32 %v783_v55, %v782_v51  ;;  %v741_v0 = vrot.slane %v740_v56, 4  ;;  %v713_v4 = vmax.f32 %v702_v60, 1e-07  ;;  %v688_v5 = vmul.f32 0.5, %v1087_v57 }
 0x2f1   :  { %v1089_v1 = vpop.eup %1088  ;;  %v729_v3 = vmul.f32 %v720_v58, %v701_v59  ;;  %v738_v45 = vrot.slane %v737_v2, 1  ;;  %v781_v31 = vadd.f32 %v780_v13, %v779_v62 }
 0x2f2   :  { %v785_v6 = vrot.slane %v784_v63, 2  ;;  %v742_v7 = vadd.f32 %v741_v0, %v740_v56  ;;  %v721_v9 = vmin.f32 %v713_v4, 0.9999999  ;;  %v704_v11 = vadd.f32 0.5, %v688_v5 }
 0x2f3   :  { %v1091_v8 = vpop.eup %1090  ;;  %v689_v12 = vmul.f32 0.5, %v1089_v1  ;;  %v739_v35 = vadd.f32 %v738_v45, %v737_v2  ;;  %v774_v2 = vld [vmem:[#allocation3] sm:$0xf] }
 0x2f4   :  { %v786_v14 = vadd.f32 %v785_v6, %v784_v63  ;;  %v743_v17 = vrot.slane %v742_v7, 2  ;;  %v690_v18 = vmul.f32 0.5, %v1091_v8  ;;  %v789_v20 = vadd.f32 %v721_v9, %v720_v58  ;;  %v724_v6 = vld [vmem:[#allocation2] sm:$0xf] }
 0x2f5   :  { %v1093_v19 = vpop.eup %1092  ;;  %v730_v21 = vmul.f32 %v721_v9, %v703_v10  ;;  %v714_v22 = vmax.f32 %v704_v11, 1e-07  ;;  %v705_v30 = vadd.f32 0.5, %v689_v12 }
 0x2f6   :  { %v787_v24 = vrot.slane %v786_v14, 1  ;;  %v744_v25 = vadd.f32 %v743_v17, %v742_v7  ;;  %v706_v23 = vadd.f32 0.5, %v690_v18  ;;  %v691_v26 = vmul.f32 0.5, %v1093_v19 }
 0x2f7   :  { %v790_v28 = vrot.slane %v789_v20, 4  ;;  %v747_v29 = vadd.f32 %v730_v21, %v729_v3  ;;  %v722_v27 = vmin.f32 %v714_v22, 0.9999999 }
 0x2f8   :  { %v788_v32 = vadd.f32 %v787_v24, %v786_v14  ;;  %v745_v33 = vrot.slane %v744_v25, 1  ;;  %v715_v34 = vmax.f32 %v706_v23, 1e-07  ;;  %v707_v42 = vadd.f32 0.5, %v691_v26 }
 0x2f9   :  { %v791_v36 = vadd.f32 %v790_v28, %v789_v20  ;;  %v748_v37 = vrot.slane %v747_v29, 4  ;;  %v731_v38 = vmul.f32 %v722_v27, %v705_v30 }
 0x2fa   :  { %v807_v39 = vsel %vm765_vm1, %v788_v32, %v781_v31  ;;  %v746_v40 = vadd.f32 %v745_v33, %v744_v25  ;;  %v723_v41 = vmin.f32 %v715_v34, 0.9999999 }
 0x2fb   :  { %v792_v43 = vrot.slane %v791_v36, 2  ;;  %v749_v15 = vadd.f32 %v748_v37, %v747_v29 }
 0x2fc   :  { %v766_v44 = vsel %vm765_vm1, %v746_v40, %v739_v35  ;;  %v796_v46 = vadd.f32 %v723_v41, %v722_v27  ;;  %v732_v47 = vmul.f32 %v723_v41, %v707_v42 }
 0x2fd   :  { %v793_v48 = vadd.f32 %v792_v43, %v791_v36  ;;  %v750_v49 = vrot.slane %v749_v15, 2 }
 0x2fe   :  { %v797_v50 = vrot.slane %v796_v46, 4  ;;  %v754_v51 = vadd.f32 %v732_v47, %v731_v38 }
 0x2ff   :  { %v794_v52 = vrot.slane %v793_v48, 1  ;;  %v751_v16 = vadd.f32 %v750_v49, %v749_v15 }
 0x300   :  { %v798_v53 = vadd.f32 %v797_v50, %v796_v46  ;;  %v755_v54 = vrot.slane %v754_v51, 4 }
 0x301   :  { %v795_v55 = vadd.f32 %v794_v52, %v793_v48  ;;  %v752_v56 = vrot.slane %v751_v16, 1 }
 0x302   :  { %v799_v57 = vrot.slane %v798_v53, 2  ;;  %v756_v58 = vadd.f32 %v755_v54, %v754_v51 }
 0x303   :  { %v808_v59 = vsel %vm767_vm2, %v795_v55, %v807_v39  ;;  %v753_v60 = vadd.f32 %v752_v56, %v751_v16 }
 0x304   :  { %v800_v61 = vadd.f32 %v799_v57, %v798_v53  ;;  %v757_v62 = vrot.slane %v756_v58, 2 }
 0x305   :  { %v768_v63 = vsel %vm767_vm2, %v753_v60, %v766_v44 }
 0x306   :  { %v801_v0 = vrot.slane %v800_v61, 1  ;;  %v758_v1 = vadd.f32 %v757_v62, %v756_v58 }
 0x308   :  { %v802_v3 = vadd.f32 %v801_v0, %v800_v61  ;;  %v759_v4 = vrot.slane %v758_v1, 1 }
 0x30a   :  { %v809_v5 = vsel %vm769_vm3, %v802_v3, %v808_v59  ;;  %v760_v7 = vadd.f32 %v759_v4, %v758_v1 }
 0x30b   :  { %v811_v8 = vadd.f32 %v809_v5, %v774_v2 }
 0x30c   :  { %v770_v9 = vsel %vm769_vm3, %v760_v7, %v768_v63 }
 0x30d   :  { %812 = vst [vmem:[#allocation3] sm:$0xf] %v811_v8  ;;  %v772_v10 = vadd.f32 %v770_v9, %v724_v6 }
 0x30f   :  { %773 = vst [vmem:[#allocation2] sm:$0xf] %v772_v10 }
 0x314   :  { %v817_v11 = vld [vmem:[#allocation3] sm:$0xf] }
 0x315   :  { %1094 = vrcp.f32 %v817_v11 }
 0x316   :  { %v816_v13 = vld [vmem:[#allocation2] sm:$0xf] }
 0x31f   :  { %v1095_v12 = vpop.eup %1094 }
 0x320   :  { %v819_v14 = vmul.f32 %v1095_v12, %v816_v13 }
 0x322   :  { %v820_v17 = vmax.f32 %v819_v14, 0.0 }
 0x324   :  { %v821_v18 = vmin.f32 %v820_v17, 1.0 }
 0x326   :  { %822 = vst [vmem:[#allocation10] sm:$0xf] %v821_v18 }
 0x327   :  { %1173 = shalt.err (!%p1170_p0)
}
 0x328   :  { %s1174_s14 = scalar_lea.hbm %s1386_s5, 64 }
 0x329   :  { %p1175_p1 = scmp.ne.s32.totalorder %s1386_s5, %s1174_s14  ;;  %p1178_p2 = scmp.lt.u32.totalorder %s1174_s14, %s1386_s5 }
 0x32b   :  { %p1180_p3 = pnand %p1178_p2, %p1175_p1 }
 0x32d   :  { %1183 = shalt.err (!%p1180_p3)
}
 0x32e   :  { %832 = dma.vmem_to_hbm [thread:$0]  %s830_s10, 64, %s1386_s5, [#allocation6]  }
 0x32f   :  { %1188 = dma.done.wait [#allocation6], 64  }
 0x330   :  { %1189 = vsyncadd [#allocation6], 4294967232 }
 0x331   :  { %836 = vsyncpa [#allocation5], 1 }
 0x332   :  { %837 = vsyncpa [#allocation8], 1 }
 0x333   :  { %838 = vsyncpa [#allocation6], 1 }

</bundles_post_ra>
